<compile_context>
chip_gen: v7x
topology: tpu7x:2x2x1
jax: 0.10.0
libtpu: 0.0.40
codegen_flags: <defaults>
</compile_context>

<pallas_src>
import functools

import numpy as np
import jax
import jax.numpy as jnp
from jax import lax
from jax.experimental import pallas as pl
from jax.experimental.pallas import tpu as pltpu

# ----------------------------- small, deterministic config -----------------------------
D = 128            # hidden_dim (lane axis)
B = 8              # batch_size
N = 8              # num_neg
NENT = 32          # nentity
NREL = 8           # nrelation
NUM_TRIPLES = 16   # |poisoned_triples|
LOCAL_EPOCH = 1    # args.local_epoch
ADV_TEMP = 1.0     # args.adversarial_temperature
LR = 0.01          # args.lr
ATTACK_K = 2       # args.attack_entity_ratio

ADAM_B1 = 0.9
ADAM_B2 = 0.999
ADAM_EPS = 1e-8


def _tdot(a, b):
    # a: (M, E), b: (M, D) -> a^T @ b : (E, D)   (scatter-add via one-hot transpose)
    return lax.dot_general(a, b, (((0,), (0,)), ((), ())),
                           preferred_element_type=jnp.float32)


# ----------------------------- fused training/meta-grad kernel -----------------------------
def _fused_kernel(rel_in, ent_in, mr_in, vr_in, me_in, ve_in,
                  bias_ref, eidx_ref, ridx_ref,
                  rel_out, ent_out, mr_out, vr_out, me_out, ve_out,
                  gsum_out, loss_out,
                  *, meta_start, bsz, nneg, nent, nrel, adv_temp, b1, b2, eps):
    i = pl.program_id(0)

    @pl.when(i == 0)
    def _init():
        rel_out[...] = rel_in[...]
        ent_out[...] = ent_in[...]
        mr_out[...] = mr_in[...]
        vr_out[...] = vr_in[...]
        me_out[...] = me_in[...]
        ve_out[...] = ve_in[...]
        gsum_out[...] = jnp.zeros_like(gsum_out)
        loss_out[...] = jnp.zeros_like(loss_out)

    f32 = jnp.float32
    ent = ent_out[...]            # (NENT, D) current entity table (resident in VMEM)
    rel = rel_out[...]            # (NREL, D) current relation table
    d = ent.shape[1]
    m = bsz * (2 + nneg)          # stacked rows: [heads | tails | negatives]

    # ---- in-kernel one-hot construction (iota-compare; no host one_hot arrays) ----
    eidx = eidx_ref[0]            # (m, 1)   int32  stacked entity ids
    ridx = ridx_ref[0]            # (bsz, 1) int32  relation ids
    ent_oh = (eidx == lax.broadcasted_iota(jnp.int32, (m, nent), 1)).astype(f32)    # (m, NENT)
    rel_oh = (ridx == lax.broadcasted_iota(jnp.int32, (bsz, nrel), 1)).astype(f32)  # (B, NREL)

    # ---- ONE stacked MXU gather for all entity rows, one tiny one for relations ----
    gath = jnp.dot(ent_oh, ent, preferred_element_type=f32)          # (m, D)
    h = gath[0:bsz]                                                  # (B, D)
    t = gath[bsz:2 * bsz]                                            # (B, D)
    neg = gath[2 * bsz:].reshape(bsz, nneg, d)                       # (B, N, D)
    r = jnp.dot(rel_oh, rel, preferred_element_type=f32)             # (B, D)

    hr = h * r                                                       # DistMult
    s_pos = jnp.sum(hr * t, axis=-1, keepdims=True)                  # (B, 1)
    s_neg = jnp.sum(hr[:, None, :] * neg, axis=-1)                   # (B, N)

    # self-adversarial negative weighting (detached in torch -> constants here)
    logits = s_neg * adv_temp
    mx = jnp.max(logits, axis=1, keepdims=True)
    e_w = jnp.exp(logits - mx)
    w = e_w * pl.reciprocal(jnp.sum(e_w, axis=1, keepdims=True), approx=True)   # (B, N)

    # ---- shared exp(-|x|) for each sigmoid / logsigmoid pair (dedup EUP work) ----
    e_pos = jnp.exp(-jnp.abs(s_pos))                                 # (B, 1)
    inv_pos = pl.reciprocal(1.0 + e_pos, approx=True)
    pos_ls = jnp.minimum(s_pos, 0.0) - jnp.log(1.0 + e_pos)          # logsigmoid(s_pos)
    sig_mpos = jnp.where(s_pos >= 0, e_pos * inv_pos, inv_pos)       # sigmoid(-s_pos)

    e_neg = jnp.exp(-jnp.abs(s_neg))                                 # (B, N)
    inv_neg = pl.reciprocal(1.0 + e_neg, approx=True)
    neg_ls = -jnp.maximum(s_neg, 0.0) - jnp.log(1.0 + e_neg)         # logsigmoid(-s_neg)
    sig_neg = jnp.where(s_neg >= 0, inv_neg, e_neg * inv_neg)        # sigmoid(s_neg)

    inv_b = 1.0 / bsz
    wneg_ls = jnp.sum(w * neg_ls, axis=1, keepdims=True)             # (B, 1)
    batch_loss = -0.5 * inv_b * (jnp.sum(pos_ls, axis=0, keepdims=True)
                                 + jnp.sum(wneg_ls, axis=0, keepdims=True))  # (1, 1)

    # ---- analytic gradients of batch_loss w.r.t. the gathered embeddings ----
    dpos = (-0.5 * inv_b) * sig_mpos                                 # (B, 1)
    dneg = (0.5 * inv_b) * w * sig_neg                               # (B, N)

    wneg = jnp.sum(dneg[:, :, None] * neg, axis=1)                   # (B, D)  (factored)
    gh = dpos * (r * t) + r * wneg                                   # (B, D)
    gr = dpos * (h * t) + h * wneg                                   # (B, D)
    gt = dpos * hr                                                   # (B, D)
    gneg = (dneg[:, :, None] * hr[:, None, :]).reshape(bsz * nneg, d)  # (B*N, D)

    # ---- ONE stacked scatter-add (K = m) + one tiny relation scatter ----
    g_stack = jnp.concatenate([gh, gt, gneg], axis=0)                # (m, D)
    g_ent = _tdot(ent_oh, g_stack)                                   # (NENT, D)
    g_rel = _tdot(rel_oh, gr)                                        # (NREL, D)

    @pl.when(i >= meta_start)
    def _acc():
        loss_out[...] = loss_out[...] + batch_loss                   # lane-dense acc
        gsum_out[...] = gsum_out[...] + g_ent

    # ---- in-kernel dense Adam step (torch.optim.Adam defaults; exact denominator) ----
    ss = bias_ref[i, 0]                                              # lr / (1 - b1^t)
    ic2 = bias_ref[i, 1]                                             # 1 / (1 - b2^t)

    me_new = b1 * me_out[...] + (1.0 - b1) * g_ent
    ve_new = b2 * ve_out[...] + (1.0 - b2) * (g_ent * g_ent)
    me_out[...] = me_new
    ve_out[...] = ve_new
    ent_out[...] = ent - ss * me_new / (jnp.sqrt(ve_new * ic2) + eps)

    mr_new = b1 * mr_out[...] + (1.0 - b1) * g_rel
    vr_new = b2 * vr_out[...] + (1.0 - b2) * (g_rel * g_rel)
    mr_out[...] = mr_new
    vr_out[...] = vr_new
    rel_out[...] = rel - ss * mr_new / (jnp.sqrt(vr_new * ic2) + eps)


def _build_fused_call(total, meta_start, bsz, nneg, nent, nrel, d):
    kernel = functools.partial(
        _fused_kernel, meta_start=meta_start, bsz=bsz, nneg=nneg, nent=nent, nrel=nrel,
        adv_temp=float(ADV_TEMP), b1=ADAM_B1, b2=ADAM_B2, eps=ADAM_EPS)
    m = bsz * (2 + nneg)

    def _full(shape):
        return pl.BlockSpec(shape, lambda i: (0, 0))

    in_specs = [
        _full((nrel, d)), _full((nent, d)),                          # rel, ent
        _full((nrel, d)), _full((nrel, d)),                          # m_rel, v_rel
        _full((nent, d)), _full((nent, d)),                          # m_ent, v_ent
        pl.BlockSpec(memory_space=pltpu.MemorySpace.SMEM),           # Adam bias table (total, 2)
        pl.BlockSpec((1, m, 1), lambda i: (i, 0, 0)),                # stacked entity indices
        pl.BlockSpec((1, bsz, 1), lambda i: (i, 0, 0)),              # relation indices
    ]
    out_specs = (
        _full((nrel, d)), _full((nent, d)),
        _full((nrel, d)), _full((nrel, d)),
        _full((nent, d)), _full((nent, d)),
        _full((nent, d)),                                            # grad-sum accumulator
        _full((1, d)),                                               # lane-dense loss acc
    )
    out_shape = (
        jax.ShapeDtypeStruct((nrel, d), jnp.float32),
        jax.ShapeDtypeStruct((nent, d), jnp.float32),
        jax.ShapeDtypeStruct((nrel, d), jnp.float32),
        jax.ShapeDtypeStruct((nrel, d), jnp.float32),
        jax.ShapeDtypeStruct((nent, d), jnp.float32),
        jax.ShapeDtypeStruct((nent, d), jnp.float32),
        jax.ShapeDtypeStruct((nent, d), jnp.float32),
        jax.ShapeDtypeStruct((1, d), jnp.float32),
    )
    return pl.pallas_call(
        kernel,
        grid=(total,),
        in_specs=in_specs,
        out_specs=out_specs,
        out_shape=out_shape,
        input_output_aliases={0: 0, 1: 1, 2: 2, 3: 3, 4: 4, 5: 5},
        compiler_params=pltpu.CompilerParams(
            dimension_semantics=("arbitrary",),        # Adam state carried sequentially
        ),
    )


# ----------------------------- one fused jitted attack run -----------------------------
@functools.partial(jax.jit, static_argnames=("n_train", "n_meta"))
def _run_fused(state, pos_idx, key, n_train, n_meta):
    """n_train inner-train passes + n_meta meta-grad passes, all in ONE pallas_call."""
    nb, bsz, _ = pos_idx.shape
    nent, d = state["ent"].shape
    nrel = state["rel"].shape[0]
    n_pass = n_train + n_meta
    total = n_pass * nb
    nb_meta = max(n_meta * nb, 1)

    # TODO(synk): the reference DataLoader reshuffles positive batches every pass; a fixed
    #             batch order is used here (negatives are re-sampled per step as in torch).
    neg_idx = jax.random.randint(key, (total, bsz, N), 0, nent, dtype=jnp.int32)
    pos_rep = jnp.tile(pos_idx, (n_pass, 1, 1))                     # (total, B, 3)
    ent_idx = jnp.concatenate(
        [pos_rep[..., 0], pos_rep[..., 2], neg_idx.reshape(total, bsz * N)],
        axis=1).astype(jnp.int32)[..., None]                        # (total, B*(2+N), 1)
    rel_idx = pos_rep[..., 1].astype(jnp.int32)[..., None]          # (total, B, 1)

    # per-step Adam bias corrections in a tiny SMEM table (t carried as traced int32)
    t0 = state["t"].astype(jnp.float32)
    steps = t0 + 1.0 + jnp.arange(total, dtype=jnp.float32)
    ss = LR / (1.0 - jnp.power(ADAM_B1, steps))
    ic2 = 1.0 / (1.0 - jnp.power(ADAM_B2, steps))
    bias = jnp.stack([ss, ic2], axis=1).astype(jnp.float32)         # (total, 2)

    call = _build_fused_call(total, meta_start=n_train * nb,
                             bsz=bsz, nneg=N, nent=nent, nrel=nrel, d=d)
    rel_n, ent_n, mr_n, vr_n, me_n, ve_n, gsum, loss_vec = call(
        state["rel"], state["ent"], state["m_rel"], state["v_rel"],
        state["m_ent"], state["v_ent"], bias, ent_idx, rel_idx)

    new_state = dict(rel=rel_n, ent=ent_n, m_rel=mr_n, v_rel=vr_n,
                     m_ent=me_n, v_ent=ve_n, t=state["t"] + total)

    attack_loss = loss_vec[0, 0] / nb_meta
    adj_grad = gsum / nb_meta                 # grad of (total_loss / batch_num) wrt ent embed
    row_grad_sum = jnp.sum(jnp.abs(adj_grad), axis=1)
    order = jnp.argsort(-row_grad_sum)        # descending |grad| row order
    return new_state, attack_loss, adj_grad, row_grad_sum, order


# ----------------------------- Metattack (JAX/Pallas version) -----------------------------
class Metattack:
    def __init__(self, poisoned_triples, rel_embed, poisoned_ent_embed,
                 victim_client_ent_embed, key):
        self.poisoned_triples = [list(map(int, t)) for t in poisoned_triples]
        # TODO(synk): victim_client_ent_embed is an optimizer param in the reference but
        #             never receives gradients from this loss, so it is carried untouched.
        self.victim_client_ent_embed = victim_client_ent_embed
        self.key = key
        rel = jnp.asarray(rel_embed, jnp.float32)
        ent = jnp.asarray(poisoned_ent_embed, jnp.float32)
        self.state = dict(
            rel=rel, ent=ent,
            m_rel=jnp.zeros_like(rel), v_rel=jnp.zeros_like(rel),
            m_ent=jnp.zeros_like(ent), v_ent=jnp.zeros_like(ent),
            t=jnp.asarray(0, jnp.int32))

    @property
    def rel_embed(self):
        return self.state["rel"]

    @property
    def poisoned_ent_embed(self):
        return self.state["ent"]

    def _batched_pos(self):
        arr = np.asarray(self.poisoned_triples, dtype=np.int32)
        nb = arr.shape[0] // B
        return jnp.asarray(arr[: nb * B].reshape(nb, B, 3))

    def inner_train(self):
        pos = self._batched_pos()
        self.key, sub = jax.random.split(self.key)
        self.state, _, _, _, _ = _run_fused(self.state, pos, sub,
                                            n_train=LOCAL_EPOCH, n_meta=0)
        return self.state["rel"], self.state["ent"]

    def get_meta_grad(self):
        # TODO(synk): as in the reference, per-batch grads are summed while Adam keeps
        #             stepping, so adj_grad approximates grad(total_loss / batch_num);
        #             it is not a true meta-gradient through the inner optimization.
        pos = self._batched_pos()
        self.key, sub = jax.random.split(self.key)
        self.state, _, adj_grad, row_grad_sum, order = _run_fused(
            self.state, pos, sub, n_train=0, n_meta=1)
        return adj_grad, row_grad_sum, order

    def forward(self, ori_poisoned_triples, perturbations):
        k = ATTACK_K
        # single fused pallas_call: LOCAL_EPOCH inner-train passes + the meta-grad pass
        pos = self._batched_pos()
        self.key, sub = jax.random.split(self.key)
        self.state, _, _, _, order = _run_fused(self.state, pos, sub,
                                                n_train=LOCAL_EPOCH, n_meta=1)
        # only the small sorted index vector crosses to the host
        row_grad_sum_idx = np.asarray(order)

        poisoned_triples = []
        arr = np.asarray(self.poisoned_triples)
        head_list = arr[:, [0]].squeeze().tolist()
        relation_list = arr[:, [1]].squeeze().tolist()
        tail_list = arr[:, [2]].squeeze().tolist()

        rng = np.random.RandomState(0)
        attack_entity_count = 0
        for ent in row_grad_sum_idx:
            ent = int(ent)
            if attack_entity_count >= k:
                break
            if ent in head_list:
                ent_index = head_list.index(ent)
                attack_entity_count += 1
            else:
                continue
            attacked_ent_real_relation_list = relation_list[ent_index]
            if isinstance(attacked_ent_real_relation_list, int):
                attacked_ent_real_relation_list = [attacked_ent_real_relation_list]
            attacked_ent_real_tail_list = tail_list[ent_index]
            if isinstance(attacked_ent_real_tail_list, int):
                attacked_ent_real_tail_list = [attacked_ent_real_tail_list]
            attacked_ent_fake_relation = list(set(relation_list) - set(attacked_ent_real_relation_list))
            attacked_ent_fake_tail = list(set(tail_list) - set(attacked_ent_real_tail_list))
            if not attacked_ent_fake_relation:
                attacked_ent_fake_relation = list(set(relation_list))
            if not attacked_ent_fake_tail:
                attacked_ent_fake_tail = list(set(tail_list))
            fake_r = rng.choice(attacked_ent_fake_relation)
            fake_tail = rng.choice(attacked_ent_fake_tail)
            for _ in range(256):
                poisoned_triples.append([int(ent), int(fake_r), int(fake_tail)])

        self.poisoned_triples = self.poisoned_triples + poisoned_triples
        return self.poisoned_triples


# ----------------------------- main -----------------------------
if __name__ == "__main__":
    key = jax.random.PRNGKey(0)
    k_rel, k_ent, k_vic, k_tri, k_run = jax.random.split(key, 5)

    init_scale = 1.0 / np.sqrt(D)
    rel_embed = jax.random.normal(k_rel, (NREL, D), jnp.float32) * init_scale
    poisoned_ent_embed = jax.random.normal(k_ent, (NENT, D), jnp.float32) * init_scale
    victim_client_ent_embed = jax.random.normal(k_vic, (NENT, D), jnp.float32) * init_scale

    heads = jax.random.randint(k_tri, (NUM_TRIPLES,), 0, NENT)
    rels = jax.random.randint(jax.random.fold_in(k_tri, 1), (NUM_TRIPLES,), 0, NREL)
    tails = jax.random.randint(jax.random.fold_in(k_tri, 2), (NUM_TRIPLES,), 0, NENT)
    poisoned_triples = np.stack(
        [np.asarray(heads), np.asarray(rels), np.asarray(tails)], axis=1).astype(np.int32)

    attack = Metattack(poisoned_triples, rel_embed, poisoned_ent_embed,
                       victim_client_ent_embed, k_run)
    out_triples = attack.forward(poisoned_triples, perturbations=ATTACK_K)

    # block on the final device state produced through the fused Pallas kernel
    jax.block_until_ready(attack.state["ent"])
    jax.block_until_ready(attack.state["rel"])
    assert len(out_triples) >= NUM_TRIPLES
    print("KERNEL_OK")
</pallas_src>

<mosaic_0001>
module attributes {stable_mosaic.version = 11 : i64} {
  func.func @_fused_kernel(%arg0: i32, %arg1: memref<8x128xf32, #tpu.memory_space<vmem>>, %arg2: memref<32x128xf32, #tpu.memory_space<vmem>>, %arg3: memref<8x128xf32, #tpu.memory_space<vmem>>, %arg4: memref<8x128xf32, #tpu.memory_space<vmem>>, %arg5: memref<32x128xf32, #tpu.memory_space<vmem>>, %arg6: memref<32x128xf32, #tpu.memory_space<vmem>>, %arg7: memref<4x2xf32, #tpu.memory_space<smem>>, %arg8: memref<1x80x1xi32, #tpu.memory_space<vmem>>, %arg9: memref<1x8x1xi32, #tpu.memory_space<vmem>>, %arg10: memref<8x128xf32, #tpu.memory_space<vmem>>, %arg11: memref<32x128xf32, #tpu.memory_space<vmem>>, %arg12: memref<8x128xf32, #tpu.memory_space<vmem>>, %arg13: memref<8x128xf32, #tpu.memory_space<vmem>>, %arg14: memref<32x128xf32, #tpu.memory_space<vmem>>, %arg15: memref<32x128xf32, #tpu.memory_space<vmem>>, %arg16: memref<32x128xf32, #tpu.memory_space<vmem>>, %arg17: memref<1x128xf32, #tpu.memory_space<vmem>>) attributes {dimension_semantics = [#tpu.dimension_semantics<arbitrary>], iteration_bounds = array<i64: 4>, scalar_prefetch = 0 : i64, scratch_operands = 0 : i64, tpu.core_type = #tpu.core_type<tc>, window_params = [{pipeline_mode = #tpu.pipeline_mode<synchronous>, transform_indices = @transform_0, window_bounds = array<i64: 8, 128>}, {pipeline_mode = #tpu.pipeline_mode<synchronous>, transform_indices = @transform_1, window_bounds = array<i64: 32, 128>}, {pipeline_mode = #tpu.pipeline_mode<synchronous>, transform_indices = @transform_2, window_bounds = array<i64: 8, 128>}, {pipeline_mode = #tpu.pipeline_mode<synchronous>, transform_indices = @transform_3, window_bounds = array<i64: 8, 128>}, {pipeline_mode = #tpu.pipeline_mode<synchronous>, transform_indices = @transform_4, window_bounds = array<i64: 32, 128>}, {pipeline_mode = #tpu.pipeline_mode<synchronous>, transform_indices = @transform_5, window_bounds = array<i64: 32, 128>}, {transform_indices = @transform_6, window_bounds = array<i64: 4, 2>}, {transform_indices = @transform_7, window_bounds = array<i64: 1, 80, 1>}, {transform_indices = @transform_8, window_bounds = array<i64: 1, 8, 1>}, {pipeline_mode = #tpu.pipeline_mode<synchronous>, transform_indices = @transform_9, window_bounds = array<i64: 8, 128>}, {pipeline_mode = #tpu.pipeline_mode<synchronous>, transform_indices = @transform_10, window_bounds = array<i64: 32, 128>}, {pipeline_mode = #tpu.pipeline_mode<synchronous>, transform_indices = @transform_11, window_bounds = array<i64: 8, 128>}, {pipeline_mode = #tpu.pipeline_mode<synchronous>, transform_indices = @transform_12, window_bounds = array<i64: 8, 128>}, {pipeline_mode = #tpu.pipeline_mode<synchronous>, transform_indices = @transform_13, window_bounds = array<i64: 32, 128>}, {pipeline_mode = #tpu.pipeline_mode<synchronous>, transform_indices = @transform_14, window_bounds = array<i64: 32, 128>}, {pipeline_mode = #tpu.pipeline_mode<synchronous>, transform_indices = @transform_15, window_bounds = array<i64: 32, 128>}, {pipeline_mode = #tpu.pipeline_mode<synchronous>, transform_indices = @transform_16, window_bounds = array<i64: 1, 128>}]} {
    %c0_i32 = arith.constant 0 : i32
    %0 = arith.cmpi eq, %arg0, %c0_i32 : i32
    %1 = arith.extui %0 : i1 to i32
    %c0_i32_0 = arith.constant 0 : i32
    %2 = arith.cmpi ne, %1, %c0_i32_0 : i32
    scf.if %2 {
      %c0_68 = arith.constant 0 : index
      %c0_69 = arith.constant 0 : index
      %178 = vector.load %arg1[%c0_68, %c0_69] : memref<8x128xf32, #tpu.memory_space<vmem>>, vector<8x128xf32>
      %c0_70 = arith.constant 0 : index
      %c0_71 = arith.constant 0 : index
      %179 = vector.load %arg10[%c0_70, %c0_71] : memref<8x128xf32, #tpu.memory_space<vmem>>, vector<8x128xf32>
      tpu.vector_store %arg10[%c0_70, %c0_71], %178 {strides = array<i32>} : memref<8x128xf32, #tpu.memory_space<vmem>>, vector<8x128xf32>,
      %c0_72 = arith.constant 0 : index
      %c0_73 = arith.constant 0 : index
      %180 = vector.load %arg2[%c0_72, %c0_73] : memref<32x128xf32, #tpu.memory_space<vmem>>, vector<32x128xf32>
      %c0_74 = arith.constant 0 : index
      %c0_75 = arith.constant 0 : index
      %181 = vector.load %arg11[%c0_74, %c0_75] : memref<32x128xf32, #tpu.memory_space<vmem>>, vector<32x128xf32>
      tpu.vector_store %arg11[%c0_74, %c0_75], %180 {strides = array<i32>} : memref<32x128xf32, #tpu.memory_space<vmem>>, vector<32x128xf32>,
      %c0_76 = arith.constant 0 : index
      %c0_77 = arith.constant 0 : index
      %182 = vector.load %arg3[%c0_76, %c0_77] : memref<8x128xf32, #tpu.memory_space<vmem>>, vector<8x128xf32>
      %c0_78 = arith.constant 0 : index
      %c0_79 = arith.constant 0 : index
      %183 = vector.load %arg12[%c0_78, %c0_79] : memref<8x128xf32, #tpu.memory_space<vmem>>, vector<8x128xf32>
      tpu.vector_store %arg12[%c0_78, %c0_79], %182 {strides = array<i32>} : memref<8x128xf32, #tpu.memory_space<vmem>>, vector<8x128xf32>,
      %c0_80 = arith.constant 0 : index
      %c0_81 = arith.constant 0 : index
      %184 = vector.load %arg4[%c0_80, %c0_81] : memref<8x128xf32, #tpu.memory_space<vmem>>, vector<8x128xf32>
      %c0_82 = arith.constant 0 : index
      %c0_83 = arith.constant 0 : index
      %185 = vector.load %arg13[%c0_82, %c0_83] : memref<8x128xf32, #tpu.memory_space<vmem>>, vector<8x128xf32>
      tpu.vector_store %arg13[%c0_82, %c0_83], %184 {strides = array<i32>} : memref<8x128xf32, #tpu.memory_space<vmem>>, vector<8x128xf32>,
      %c0_84 = arith.constant 0 : index
      %c0_85 = arith.constant 0 : index
      %186 = vector.load %arg5[%c0_84, %c0_85] : memref<32x128xf32, #tpu.memory_space<vmem>>, vector<32x128xf32>
      %c0_86 = arith.constant 0 : index
      %c0_87 = arith.constant 0 : index
      %187 = vector.load %arg14[%c0_86, %c0_87] : memref<32x128xf32, #tpu.memory_space<vmem>>, vector<32x128xf32>
      tpu.vector_store %arg14[%c0_86, %c0_87], %186 {strides = array<i32>} : memref<32x128xf32, #tpu.memory_space<vmem>>, vector<32x128xf32>,
      %c0_88 = arith.constant 0 : index
      %c0_89 = arith.constant 0 : index
      %188 = vector.load %arg6[%c0_88, %c0_89] : memref<32x128xf32, #tpu.memory_space<vmem>>, vector<32x128xf32>
      %c0_90 = arith.constant 0 : index
      %c0_91 = arith.constant 0 : index
      %189 = vector.load %arg15[%c0_90, %c0_91] : memref<32x128xf32, #tpu.memory_space<vmem>>, vector<32x128xf32>
      tpu.vector_store %arg15[%c0_90, %c0_91], %188 {strides = array<i32>} : memref<32x128xf32, #tpu.memory_space<vmem>>, vector<32x128xf32>,
      %cst_92 = arith.constant 0.000000e+00 : f32
      %190 = vector.broadcast %cst_92 : f32 to vector<32x128xf32>
      %c0_93 = arith.constant 0 : index
      %c0_94 = arith.constant 0 : index
      %191 = vector.load %arg16[%c0_93, %c0_94] : memref<32x128xf32, #tpu.memory_space<vmem>>, vector<32x128xf32>
      tpu.vector_store %arg16[%c0_93, %c0_94], %190 {strides = array<i32>} : memref<32x128xf32, #tpu.memory_space<vmem>>, vector<32x128xf32>,
      %cst_95 = arith.constant 0.000000e+00 : f32
      %192 = vector.broadcast %cst_95 : f32 to vector<1x128xf32>
      %c0_96 = arith.constant 0 : index
      %c0_97 = arith.constant 0 : index
      %193 = vector.load %arg17[%c0_96, %c0_97] : memref<1x128xf32, #tpu.memory_space<vmem>>, vector<1x128xf32>
      tpu.vector_store %arg17[%c0_96, %c0_97], %192 {strides = array<i32>} : memref<1x128xf32, #tpu.memory_space<vmem>>, vector<1x128xf32>,
    } else {
    }
    %c0 = arith.constant 0 : index
    %c0_1 = arith.constant 0 : index
    %3 = vector.load %arg11[%c0, %c0_1] : memref<32x128xf32, #tpu.memory_space<vmem>>, vector<32x128xf32>
    %c0_2 = arith.constant 0 : index
    %c0_3 = arith.constant 0 : index
    %4 = vector.load %arg10[%c0_2, %c0_3] : memref<8x128xf32, #tpu.memory_space<vmem>>, vector<8x128xf32>
    %c0_4 = arith.constant 0 : index
    %c0_5 = arith.constant 0 : index
    %c0_6 = arith.constant 0 : index
    %5 = vector.load %arg8[%c0_4, %c0_5, %c0_6] : memref<1x80x1xi32, #tpu.memory_space<vmem>>, vector<1x80x1xi32>
    %6 = vector.shape_cast %5 : vector<1x80x1xi32> to vector<80x1xi32>
    %c0_7 = arith.constant 0 : index
    %c0_8 = arith.constant 0 : index
    %c0_9 = arith.constant 0 : index
    %7 = vector.load %arg9[%c0_7, %c0_8, %c0_9] : memref<1x8x1xi32, #tpu.memory_space<vmem>>, vector<1x8x1xi32>
    %8 = vector.shape_cast %7 : vector<1x8x1xi32> to vector<8x1xi32>
    %9 = tpu.iota {dimensions = array<i32: 1>} : vector<80x32xi32>
    %10 = vector.broadcast %6 : vector<80x1xi32> to vector<80x32xi32>
    %11 = arith.cmpi eq, %10, %9 : vector<80x32xi32>
    %12 = arith.extui %11 : vector<80x32xi1> to vector<80x32xi32>
    %13 = arith.sitofp %12 : vector<80x32xi32> to vector<80x32xf32>
    %14 = tpu.iota {dimensions = array<i32: 1>} : vector<8x8xi32>
    %15 = vector.broadcast %8 : vector<8x1xi32> to vector<8x8xi32>
    %16 = arith.cmpi eq, %15, %14 : vector<8x8xi32>
    %17 = arith.extui %16 : vector<8x8xi1> to vector<8x8xi32>
    %18 = arith.sitofp %17 : vector<8x8xi32> to vector<8x8xf32>
    %cst = arith.constant dense<0.000000e+00> : vector<80x128xf32>
    %19 = tpu.matmul %13, %3, %cst {dimension_numbers = #tpu.dot_dimension_numbers<[1], [0], [0], [1], [0, 0, 1, 1], [], []>} : vector<80x32xf32>, vector<32x128xf32>, vector<80x128xf32> -> vector<80x128xf32>
    %20 = vector.extract_strided_slice %19 {offsets = [0, 0], sizes = [8, 128], strides = [1, 1]} : vector<80x128xf32> to vector<8x128xf32>
    %21 = vector.extract_strided_slice %19 {offsets = [8, 0], sizes = [8, 128], strides = [1, 1]} : vector<80x128xf32> to vector<8x128xf32>
    %22 = vector.extract_strided_slice %19 {offsets = [16, 0], sizes = [64, 128], strides = [1, 1]} : vector<80x128xf32> to vector<64x128xf32>
    %23 = vector.shape_cast %22 : vector<64x128xf32> to vector<8x8x128xf32>
    %cst_10 = arith.constant dense<0.000000e+00> : vector<8x128xf32>
    %24 = tpu.matmul %18, %4, %cst_10 {dimension_numbers = #tpu.dot_dimension_numbers<[1], [0], [0], [1], [0, 0, 1, 1], [], []>} : vector<8x8xf32>, vector<8x128xf32>, vector<8x128xf32> -> vector<8x128xf32>
    %25 = arith.mulf %20, %24 : vector<8x128xf32>
    %26 = arith.mulf %25, %21 : vector<8x128xf32>
    %cst_11 = arith.constant dense<0.000000e+00> : vector<8xf32>
    %27 = vector.multi_reduction <add>, %26, %cst_11 [1] : vector<8x128xf32> to vector<8xf32>
    %28 = vector.shape_cast %27 : vector<8xf32> to vector<8x1xf32>
    %29 = vector.shape_cast %25 : vector<8x128xf32> to vector<8x1x128xf32>
    %30 = vector.broadcast %29 : vector<8x1x128xf32> to vector<8x8x128xf32>
    %31 = arith.mulf %30, %23 : vector<8x8x128xf32>
    %cst_12 = arith.constant dense<0.000000e+00> : vector<8x8xf32>
    %32 = vector.multi_reduction <add>, %31, %cst_12 [2] : vector<8x8x128xf32> to vector<8x8xf32>
    %cst_13 = arith.constant 1.000000e+00 : f32
    %33 = vector.broadcast %cst_13 : f32 to vector<8x8xf32>
    %34 = arith.mulf %32, %33 : vector<8x8xf32>
    %cst_14 = arith.constant dense<0xFF800000> : vector<8xf32>
    %35 = vector.multi_reduction <maximumf>, %34, %cst_14 [1] : vector<8x8xf32> to vector<8xf32>
    %36 = vector.shape_cast %35 : vector<8xf32> to vector<8x1xf32>
    %37 = vector.broadcast %36 : vector<8x1xf32> to vector<8x8xf32>
    %38 = arith.subf %34, %37 : vector<8x8xf32>
    %39 = math.exp %38 : vector<8x8xf32>
    %cst_15 = arith.constant dense<0.000000e+00> : vector<8xf32>
    %40 = vector.multi_reduction <add>, %39, %cst_15 [1] : vector<8x8xf32> to vector<8xf32>
    %41 = vector.shape_cast %40 : vector<8xf32> to vector<8x1xf32>
    %42 = tpu.reciprocal %41 {approx = true} : vector<8x1xf32> -> vector<8x1xf32>
    %43 = vector.broadcast %42 : vector<8x1xf32> to vector<8x8xf32>
    %44 = arith.mulf %39, %43 : vector<8x8xf32>
    %45 = math.absf %28 : vector<8x1xf32>
    %cst_16 = arith.constant 0.000000e+00 : f32
    %46 = vector.broadcast %cst_16 : f32 to vector<8x1xf32>
    %47 = arith.subf %46, %45 : vector<8x1xf32>
    %48 = math.exp %47 : vector<8x1xf32>
    %cst_17 = arith.constant 1.000000e+00 : f32
    %49 = vector.broadcast %cst_17 : f32 to vector<8x1xf32>
    %50 = arith.addf %49, %48 : vector<8x1xf32>
    %51 = tpu.reciprocal %50 {approx = true} : vector<8x1xf32> -> vector<8x1xf32>
    %cst_18 = arith.constant 0.000000e+00 : f32
    %52 = vector.broadcast %cst_18 : f32 to vector<8x1xf32>
    %53 = arith.minimumf %28, %52 : vector<8x1xf32>
    %cst_19 = arith.constant 1.000000e+00 : f32
    %54 = vector.broadcast %cst_19 : f32 to vector<8x1xf32>
    %55 = arith.addf %54, %48 : vector<8x1xf32>
    %56 = math.log %55 : vector<8x1xf32>
    %57 = arith.subf %53, %56 : vector<8x1xf32>
    %cst_20 = arith.constant 0.000000e+00 : f32
    %58 = vector.broadcast %cst_20 : f32 to vector<8x1xf32>
    %59 = arith.cmpf oge, %28, %58 : vector<8x1xf32>
    %60 = arith.mulf %48, %51 : vector<8x1xf32>
    %61 = arith.select %59, %60, %51 : vector<8x1xi1>, vector<8x1xf32>
    %62 = math.absf %32 : vector<8x8xf32>
    %cst_21 = arith.constant 0.000000e+00 : f32
    %63 = vector.broadcast %cst_21 : f32 to vector<8x8xf32>
    %64 = arith.subf %63, %62 : vector<8x8xf32>
    %65 = math.exp %64 : vector<8x8xf32>
    %cst_22 = arith.constant 1.000000e+00 : f32
    %66 = vector.broadcast %cst_22 : f32 to vector<8x8xf32>
    %67 = arith.addf %66, %65 : vector<8x8xf32>
    %68 = tpu.reciprocal %67 {approx = true} : vector<8x8xf32> -> vector<8x8xf32>
    %cst_23 = arith.constant 0.000000e+00 : f32
    %69 = vector.broadcast %cst_23 : f32 to vector<8x8xf32>
    %70 = arith.maximumf %32, %69 : vector<8x8xf32>
    %cst_24 = arith.constant 0.000000e+00 : f32
    %71 = vector.broadcast %cst_24 : f32 to vector<8x8xf32>
    %72 = arith.subf %71, %70 : vector<8x8xf32>
    %cst_25 = arith.constant 1.000000e+00 : f32
    %73 = vector.broadcast %cst_25 : f32 to vector<8x8xf32>
    %74 = arith.addf %73, %65 : vector<8x8xf32>
    %75 = math.log %74 : vector<8x8xf32>
    %76 = arith.subf %72, %75 : vector<8x8xf32>
    %cst_26 = arith.constant 0.000000e+00 : f32
    %77 = vector.broadcast %cst_26 : f32 to vector<8x8xf32>
    %78 = arith.cmpf oge, %32, %77 : vector<8x8xf32>
    %79 = arith.mulf %65, %68 : vector<8x8xf32>
    %80 = arith.select %78, %68, %79 : vector<8x8xi1>, vector<8x8xf32>
    %81 = arith.mulf %44, %76 : vector<8x8xf32>
    %cst_27 = arith.constant dense<0.000000e+00> : vector<8xf32>
    %82 = vector.multi_reduction <add>, %81, %cst_27 [1] : vector<8x8xf32> to vector<8xf32>
    %83 = vector.shape_cast %82 : vector<8xf32> to vector<8x1xf32>
    %cst_28 = arith.constant dense<0.000000e+00> : vector<1xf32>
    %84 = vector.multi_reduction <add>, %57, %cst_28 [0] : vector<8x1xf32> to vector<1xf32>
    %85 = vector.shape_cast %84 : vector<1xf32> to vector<1x1xf32>
    %cst_29 = arith.constant dense<0.000000e+00> : vector<1xf32>
    %86 = vector.multi_reduction <add>, %83, %cst_29 [0] : vector<8x1xf32> to vector<1xf32>
    %87 = vector.shape_cast %86 : vector<1xf32> to vector<1x1xf32>
    %88 = arith.addf %85, %87 : vector<1x1xf32>
    %cst_30 = arith.constant -6.250000e-02 : f32
    %89 = vector.broadcast %cst_30 : f32 to vector<1x1xf32>
    %90 = arith.mulf %89, %88 : vector<1x1xf32>
    %cst_31 = arith.constant -6.250000e-02 : f32
    %91 = vector.broadcast %cst_31 : f32 to vector<8x1xf32>
    %92 = arith.mulf %91, %61 : vector<8x1xf32>
    %cst_32 = arith.constant 6.250000e-02 : f32
    %93 = vector.broadcast %cst_32 : f32 to vector<8x8xf32>
    %94 = arith.mulf %93, %44 : vector<8x8xf32>
    %95 = arith.mulf %94, %80 : vector<8x8xf32>
    %96 = vector.shape_cast %95 : vector<8x8xf32> to vector<8x8x1xf32>
    %97 = vector.broadcast %96 : vector<8x8x1xf32> to vector<8x8x128xf32>
    %98 = arith.mulf %97, %23 : vector<8x8x128xf32>
    %cst_33 = arith.constant dense<0.000000e+00> : vector<8x128xf32>
    %99 = vector.multi_reduction <add>, %98, %cst_33 [1] : vector<8x8x128xf32> to vector<8x128xf32>
    %100 = arith.mulf %24, %21 : vector<8x128xf32>
    %101 = vector.broadcast %92 : vector<8x1xf32> to vector<8x128xf32>
    %102 = arith.mulf %101, %100 : vector<8x128xf32>
    %103 = arith.mulf %24, %99 : vector<8x128xf32>
    %104 = arith.addf %102, %103 : vector<8x128xf32>
    %105 = arith.mulf %20, %21 : vector<8x128xf32>
    %106 = vector.broadcast %92 : vector<8x1xf32> to vector<8x128xf32>
    %107 = arith.mulf %106, %105 : vector<8x128xf32>
    %108 = arith.mulf %20, %99 : vector<8x128xf32>
    %109 = arith.addf %107, %108 : vector<8x128xf32>
    %110 = vector.broadcast %92 : vector<8x1xf32> to vector<8x128xf32>
    %111 = arith.mulf %110, %25 : vector<8x128xf32>
    %112 = vector.shape_cast %95 : vector<8x8xf32> to vector<8x8x1xf32>
    %113 = vector.shape_cast %25 : vector<8x128xf32> to vector<8x1x128xf32>
    %114 = vector.broadcast %112 : vector<8x8x1xf32> to vector<8x8x128xf32>
    %115 = vector.broadcast %113 : vector<8x1x128xf32> to vector<8x8x128xf32>
    %116 = arith.mulf %114, %115 : vector<8x8x128xf32>
    %117 = vector.shape_cast %116 : vector<8x8x128xf32> to vector<64x128xf32>
    %118 = tpu.concatenate %104, %111, %117 in 0 : vector<8x128xf32>, vector<8x128xf32>, vector<64x128xf32> -> vector<80x128xf32>
    %cst_34 = arith.constant dense<0.000000e+00> : vector<32x128xf32>
    %119 = tpu.matmul %13, %118, %cst_34 {dimension_numbers = #tpu.dot_dimension_numbers<[0], [0], [1], [1], [0, 1, 1, 1], [], []>} : vector<80x32xf32>, vector<80x128xf32>, vector<32x128xf32> -> vector<32x128xf32>
    %cst_35 = arith.constant dense<0.000000e+00> : vector<8x128xf32>
    %120 = tpu.matmul %18, %109, %cst_35 {dimension_numbers = #tpu.dot_dimension_numbers<[0], [0], [1], [1], [0, 1, 1, 1], [], []>} : vector<8x8xf32>, vector<8x128xf32>, vector<8x128xf32> -> vector<8x128xf32>
    %c2_i32 = arith.constant 2 : i32
    %121 = arith.cmpi sge, %arg0, %c2_i32 : i32
    %122 = arith.extui %121 : i1 to i32
    %c0_i32_36 = arith.constant 0 : i32
    %123 = arith.cmpi ne, %122, %c0_i32_36 : i32
    scf.if %123 {
      %c0_68 = arith.constant 0 : index
      %c0_69 = arith.constant 0 : index
      %178 = vector.load %arg17[%c0_68, %c0_69] : memref<1x128xf32, #tpu.memory_space<vmem>>, vector<1x128xf32>
      %179 = vector.broadcast %90 : vector<1x1xf32> to vector<1x128xf32>
      %180 = arith.addf %178, %179 : vector<1x128xf32>
      %c0_70 = arith.constant 0 : index
      %c0_71 = arith.constant 0 : index
      %181 = vector.load %arg17[%c0_70, %c0_71] : memref<1x128xf32, #tpu.memory_space<vmem>>, vector<1x128xf32>
      tpu.vector_store %arg17[%c0_70, %c0_71], %180 {strides = array<i32>} : memref<1x128xf32, #tpu.memory_space<vmem>>, vector<1x128xf32>,
      %c0_72 = arith.constant 0 : index
      %c0_73 = arith.constant 0 : index
      %182 = vector.load %arg16[%c0_72, %c0_73] : memref<32x128xf32, #tpu.memory_space<vmem>>, vector<32x128xf32>
      %183 = arith.addf %182, %119 : vector<32x128xf32>
      %c0_74 = arith.constant 0 : index
      %c0_75 = arith.constant 0 : index
      %184 = vector.load %arg16[%c0_74, %c0_75] : memref<32x128xf32, #tpu.memory_space<vmem>>, vector<32x128xf32>
      tpu.vector_store %arg16[%c0_74, %c0_75], %183 {strides = array<i32>} : memref<32x128xf32, #tpu.memory_space<vmem>>, vector<32x128xf32>,
    } else {
    }
    %124 = arith.index_cast %arg0 : i32 to index
    %c0_37 = arith.constant 0 : index
    %125 = memref.load %arg7[%124, %c0_37] : memref<4x2xf32, #tpu.memory_space<smem>>
    %126 = arith.index_cast %arg0 : i32 to index
    %c1 = arith.constant 1 : index
    %127 = memref.load %arg7[%126, %c1] : memref<4x2xf32, #tpu.memory_space<smem>>
    %c0_38 = arith.constant 0 : index
    %c0_39 = arith.constant 0 : index
    %128 = vector.load %arg14[%c0_38, %c0_39] : memref<32x128xf32, #tpu.memory_space<vmem>>, vector<32x128xf32>
    %cst_40 = arith.constant 0.899999976 : f32
    %129 = vector.broadcast %cst_40 : f32 to vector<32x128xf32>
    %130 = arith.mulf %129, %128 : vector<32x128xf32>
    %cst_41 = arith.constant 1.000000e-01 : f32
    %131 = vector.broadcast %cst_41 : f32 to vector<32x128xf32>
    %132 = arith.mulf %131, %119 : vector<32x128xf32>
    %133 = arith.addf %130, %132 : vector<32x128xf32>
    %c0_42 = arith.constant 0 : index
    %c0_43 = arith.constant 0 : index
    %134 = vector.load %arg15[%c0_42, %c0_43] : memref<32x128xf32, #tpu.memory_space<vmem>>, vector<32x128xf32>
    %cst_44 = arith.constant 9.990000e-01 : f32
    %135 = vector.broadcast %cst_44 : f32 to vector<32x128xf32>
    %136 = arith.mulf %135, %134 : vector<32x128xf32>
    %137 = arith.mulf %119, %119 : vector<32x128xf32>
    %cst_45 = arith.constant 1.000000e-03 : f32
    %138 = vector.broadcast %cst_45 : f32 to vector<32x128xf32>
    %139 = arith.mulf %138, %137 : vector<32x128xf32>
    %140 = arith.addf %136, %139 : vector<32x128xf32>
    %c0_46 = arith.constant 0 : index
    %c0_47 = arith.constant 0 : index
    %141 = vector.load %arg14[%c0_46, %c0_47] : memref<32x128xf32, #tpu.memory_space<vmem>>, vector<32x128xf32>
    tpu.vector_store %arg14[%c0_46, %c0_47], %133 {strides = array<i32>} : memref<32x128xf32, #tpu.memory_space<vmem>>, vector<32x128xf32>,
    %c0_48 = arith.constant 0 : index
    %c0_49 = arith.constant 0 : index
    %142 = vector.load %arg15[%c0_48, %c0_49] : memref<32x128xf32, #tpu.memory_space<vmem>>, vector<32x128xf32>
    tpu.vector_store %arg15[%c0_48, %c0_49], %140 {strides = array<i32>} : memref<32x128xf32, #tpu.memory_space<vmem>>, vector<32x128xf32>,
    %143 = vector.broadcast %125 : f32 to vector<32x128xf32>
    %144 = arith.mulf %143, %133 : vector<32x128xf32>
    %145 = vector.broadcast %127 : f32 to vector<32x128xf32>
    %146 = arith.mulf %140, %145 : vector<32x128xf32>
    %147 = math.sqrt %146 : vector<32x128xf32>
    %cst_50 = arith.constant 9.99999993E-9 : f32
    %148 = vector.broadcast %cst_50 : f32 to vector<32x128xf32>
    %149 = arith.addf %147, %148 : vector<32x128xf32>
    %150 = arith.divf %144, %149 : vector<32x128xf32>
    %151 = arith.subf %3, %150 : vector<32x128xf32>
    %c0_51 = arith.constant 0 : index
    %c0_52 = arith.constant 0 : index
    %152 = vector.load %arg11[%c0_51, %c0_52] : memref<32x128xf32, #tpu.memory_space<vmem>>, vector<32x128xf32>
    tpu.vector_store %arg11[%c0_51, %c0_52], %151 {strides = array<i32>} : memref<32x128xf32, #tpu.memory_space<vmem>>, vector<32x128xf32>,
    %c0_53 = arith.constant 0 : index
    %c0_54 = arith.constant 0 : index
    %153 = vector.load %arg12[%c0_53, %c0_54] : memref<8x128xf32, #tpu.memory_space<vmem>>, vector<8x128xf32>
    %cst_55 = arith.constant 0.899999976 : f32
    %154 = vector.broadcast %cst_55 : f32 to vector<8x128xf32>
    %155 = arith.mulf %154, %153 : vector<8x128xf32>
    %cst_56 = arith.constant 1.000000e-01 : f32
    %156 = vector.broadcast %cst_56 : f32 to vector<8x128xf32>
    %157 = arith.mulf %156, %120 : vector<8x128xf32>
    %158 = arith.addf %155, %157 : vector<8x128xf32>
    %c0_57 = arith.constant 0 : index
    %c0_58 = arith.constant 0 : index
    %159 = vector.load %arg13[%c0_57, %c0_58] : memref<8x128xf32, #tpu.memory_space<vmem>>, vector<8x128xf32>
    %cst_59 = arith.constant 9.990000e-01 : f32
    %160 = vector.broadcast %cst_59 : f32 to vector<8x128xf32>
    %161 = arith.mulf %160, %159 : vector<8x128xf32>
    %162 = arith.mulf %120, %120 : vector<8x128xf32>
    %cst_60 = arith.constant 1.000000e-03 : f32
    %163 = vector.broadcast %cst_60 : f32 to vector<8x128xf32>
    %164 = arith.mulf %163, %162 : vector<8x128xf32>
    %165 = arith.addf %161, %164 : vector<8x128xf32>
    %c0_61 = arith.constant 0 : index
    %c0_62 = arith.constant 0 : index
    %166 = vector.load %arg12[%c0_61, %c0_62] : memref<8x128xf32, #tpu.memory_space<vmem>>, vector<8x128xf32>
    tpu.vector_store %arg12[%c0_61, %c0_62], %158 {strides = array<i32>} : memref<8x128xf32, #tpu.memory_space<vmem>>, vector<8x128xf32>,
    %c0_63 = arith.constant 0 : index
    %c0_64 = arith.constant 0 : index
    %167 = vector.load %arg13[%c0_63, %c0_64] : memref<8x128xf32, #tpu.memory_space<vmem>>, vector<8x128xf32>
    tpu.vector_store %arg13[%c0_63, %c0_64], %165 {strides = array<i32>} : memref<8x128xf32, #tpu.memory_space<vmem>>, vector<8x128xf32>,
    %168 = vector.broadcast %125 : f32 to vector<8x128xf32>
    %169 = arith.mulf %168, %158 : vector<8x128xf32>
    %170 = vector.broadcast %127 : f32 to vector<8x128xf32>
    %171 = arith.mulf %165, %170 : vector<8x128xf32>
    %172 = math.sqrt %171 : vector<8x128xf32>
    %cst_65 = arith.constant 9.99999993E-9 : f32
    %173 = vector.broadcast %cst_65 : f32 to vector<8x128xf32>
    %174 = arith.addf %172, %173 : vector<8x128xf32>
    %175 = arith.divf %169, %174 : vector<8x128xf32>
    %176 = arith.subf %4, %175 : vector<8x128xf32>
    %c0_66 = arith.constant 0 : index
    %c0_67 = arith.constant 0 : index
    %177 = vector.load %arg10[%c0_66, %c0_67] : memref<8x128xf32, #tpu.memory_space<vmem>>, vector<8x128xf32>
    tpu.vector_store %arg10[%c0_66, %c0_67], %176 {strides = array<i32>} : memref<8x128xf32, #tpu.memory_space<vmem>>, vector<8x128xf32>,
    return
  }
  func.func @transform_0(%arg0: i32) -> (i32, i32) {
    %c0_i32 = arith.constant 0 : i32
    %c0_i32_0 = arith.constant 0 : i32
    %c0_i32_1 = arith.constant 0 : i32
    return %c0_i32, %c0_i32_0 : i32, i32
  }
  func.func @transform_1(%arg0: i32) -> (i32, i32) {
    %c0_i32 = arith.constant 0 : i32
    %c0_i32_0 = arith.constant 0 : i32
    %c0_i32_1 = arith.constant 0 : i32
    return %c0_i32, %c0_i32_0 : i32, i32
  }
  func.func @transform_2(%arg0: i32) -> (i32, i32) {
    %c0_i32 = arith.constant 0 : i32
    %c0_i32_0 = arith.constant 0 : i32
    %c0_i32_1 = arith.constant 0 : i32
    return %c0_i32, %c0_i32_0 : i32, i32
  }
  func.func @transform_3(%arg0: i32) -> (i32, i32) {
    %c0_i32 = arith.constant 0 : i32
    %c0_i32_0 = arith.constant 0 : i32
    %c0_i32_1 = arith.constant 0 : i32
    return %c0_i32, %c0_i32_0 : i32, i32
  }
  func.func @transform_4(%arg0: i32) -> (i32, i32) {
    %c0_i32 = arith.constant 0 : i32
    %c0_i32_0 = arith.constant 0 : i32
    %c0_i32_1 = arith.constant 0 : i32
    return %c0_i32, %c0_i32_0 : i32, i32
  }
  func.func @transform_5(%arg0: i32) -> (i32, i32) {
    %c0_i32 = arith.constant 0 : i32
    %c0_i32_0 = arith.constant 0 : i32
    %c0_i32_1 = arith.constant 0 : i32
    return %c0_i32, %c0_i32_0 : i32, i32
  }
  func.func @transform_6(%arg0: i32) -> (i32, i32) {
    %c0_i32 = arith.constant 0 : i32
    %c0_i32_0 = arith.constant 0 : i32
    %c0_i32_1 = arith.constant 0 : i32
    return %c0_i32, %c0_i32_0 : i32, i32
  }
  func.func @transform_7(%arg0: i32) -> (i32, i32, i32) {
    %c0_i32 = arith.constant 0 : i32
    %c0_i32_0 = arith.constant 0 : i32
    %c0_i32_1 = arith.constant 0 : i32
    return %arg0, %c0_i32, %c0_i32_0 : i32, i32, i32
  }
  func.func @transform_8(%arg0: i32) -> (i32, i32, i32) {
    %c0_i32 = arith.constant 0 : i32
    %c0_i32_0 = arith.constant 0 : i32
    %c0_i32_1 = arith.constant 0 : i32
    return %arg0, %c0_i32, %c0_i32_0 : i32, i32, i32
  }
  func.func @transform_9(%arg0: i32) -> (i32, i32) {
    %c0_i32 = arith.constant 0 : i32
    %c0_i32_0 = arith.constant 0 : i32
    %c0_i32_1 = arith.constant 0 : i32
    return %c0_i32, %c0_i32_0 : i32, i32
  }
  func.func @transform_10(%arg0: i32) -> (i32, i32) {
    %c0_i32 = arith.constant 0 : i32
    %c0_i32_0 = arith.constant 0 : i32
    %c0_i32_1 = arith.constant 0 : i32
    return %c0_i32, %c0_i32_0 : i32, i32
  }
  func.func @transform_11(%arg0: i32) -> (i32, i32) {
    %c0_i32 = arith.constant 0 : i32
    %c0_i32_0 = arith.constant 0 : i32
    %c0_i32_1 = arith.constant 0 : i32
    return %c0_i32, %c0_i32_0 : i32, i32
  }
  func.func @transform_12(%arg0: i32) -> (i32, i32) {
    %c0_i32 = arith.constant 0 : i32
    %c0_i32_0 = arith.constant 0 : i32
    %c0_i32_1 = arith.constant 0 : i32
    return %c0_i32, %c0_i32_0 : i32, i32
  }
  func.func @transform_13(%arg0: i32) -> (i32, i32) {
    %c0_i32 = arith.constant 0 : i32
    %c0_i32_0 = arith.constant 0 : i32
    %c0_i32_1 = arith.constant 0 : i32
    return %c0_i32, %c0_i32_0 : i32, i32
  }
  func.func @transform_14(%arg0: i32) -> (i32, i32) {
    %c0_i32 = arith.constant 0 : i32
    %c0_i32_0 = arith.constant 0 : i32
    %c0_i32_1 = arith.constant 0 : i32
    return %c0_i32, %c0_i32_0 : i32, i32
  }
  func.func @transform_15(%arg0: i32) -> (i32, i32) {
    %c0_i32 = arith.constant 0 : i32
    %c0_i32_0 = arith.constant 0 : i32
    %c0_i32_1 = arith.constant 0 : i32
    return %c0_i32, %c0_i32_0 : i32, i32
  }
  func.func @transform_16(%arg0: i32) -> (i32, i32) {
    %c0_i32 = arith.constant 0 : i32
    %c0_i32_0 = arith.constant 0 : i32
    %c0_i32_1 = arith.constant 0 : i32
    return %c0_i32, %c0_i32_0 : i32, i32
  }
}

</mosaic_0001>

<bundles_post_ra>
// kernel: neg.1
= control target key start
LH: loop header
LB: loop body
LE: loop exit
PB: predicated region body
PF: predicated region fallthrough
CT: control target
= control target key end

     0   :  { %s24_s0 = inlined_call_operand.vmem [shape: f32[32], index: 0, kind: input, shape index: {}]   ;;  %s25_s1 = inlined_call_operand.vmem [shape: f32[32], index: 1, kind: output, shape index: {}]  }
   0x1   :  { %v2_v0 = vld [vmem:[%s24_s0] sm:$0x1] }
   0x2   :  { %v5_v1 = vxor.u32 2147483648, %v2_v0 }
   0x4   :  { %7 = vst [vmem:[%s25_s1] sm:$0x1] %v5_v1 }

// kernel: _run_fused.1
= control target key start
LH: loop header
LB: loop body
LE: loop exit
PB: predicated region body
PF: predicated region fallthrough
CT: control target
= control target key end

     0   :  { %s3280_s0 = inlined_call_operand.vmem [shape: f32[8,128], index: 0, kind: input, shape index: {}, may-alias: {0,9}]   ;;  %s3281_s1 = inlined_call_operand.vmem [shape: f32[32,128], index: 1, kind: input, shape index: {}, may-alias: {1,10}]   ;;  %s3282_s2 = inlined_call_operand.vmem [shape: f32[8,128], index: 2, kind: input, shape index: {}, may-alias: {2,11}]   ;;  %s3283_s3 = inlined_call_operand.vmem [shape: f32[8,128], index: 3, kind: input, shape index: {}, may-alias: {3,12}]   ;;  %s3284_s4 = inlined_call_operand.vmem [shape: f32[32,128], index: 4, kind: input, shape index: {}, may-alias: {4,13}]   ;;  %s3285_s5 = inlined_call_operand.vmem [shape: f32[32,128], index: 5, kind: input, shape index: {}, may-alias: {5,14}]   ;;  %s3286_s6 = inlined_call_operand.vmem [shape: f32[4,2], index: 6, kind: input, shape index: {}]   ;;  %s3287_s7 = inlined_call_operand.vmem [shape: s32[4,80,1], index: 7, kind: input, shape index: {}]   ;;  %s3288_s8 = inlined_call_operand.vmem [shape: s32[4,8,1], index: 8, kind: input, shape index: {}]   ;;  %s3289_s9 = inlined_call_operand.vmem [shape: f32[8,128], index: 9, kind: output, shape index: {0}, may-alias: {0,9}]   ;;  %s3290_s10 = inlined_call_operand.vmem [shape: f32[32,128], index: 10, kind: output, shape index: {1}, may-alias: {1,10}]   ;;  %s3291_s11 = inlined_call_operand.vmem [shape: f32[8,128], index: 11, kind: output, shape index: {2}, may-alias: {2,11}]   ;;  %s3292_s12 = inlined_call_operand.vmem [shape: f32[8,128], index: 12, kind: output, shape index: {3}, may-alias: {3,12}]   ;;  %s3293_s13 = inlined_call_operand.vmem [shape: f32[32,128], index: 13, kind: output, shape index: {4}, may-alias: {4,13}]   ;;  %s3294_s14 = inlined_call_operand.vmem [shape: f32[32,128], index: 14, kind: output, shape index: {5}, may-alias: {5,14}]   ;;  %s3295_s15 = inlined_call_operand.vmem [shape: f32[32,128], index: 15, kind: output, shape index: {6}]   ;;  %s3296_s16 = inlined_call_operand.vmem [shape: f32[1,128], index: 16, kind: output, shape index: {7}]  }
   0x1   :  { %3334 = sst [smem:[#allocation37_spill]] %s3280_s0 }
   0x2   :  { %3335 = sst [smem:[#allocation38_spill]] %s3286_s6 }
   0x3   :  { %3336 = sst [smem:[#allocation39_spill]] %s3287_s7 }
   0x4   :  { %22 = vsyncpa [#allocation3], 0  ;;  %s2470_s21 = smov 0  }
   0x5 LB: > { %s2476_s22 = sadd.s32 4294967295, %s2377_s21   ;;  %p2075_p0 = scmp.ge.s32.totalorder %s2377_s21, 1  ;;  %s2377_s21 = sphi %s2470_s21, %s28_s21  }
   0x6   : > { %p400_p1 = scmp.lt.s32.totalorder %s2377_s21, 5  ;;  %s3337_s6 = sld [smem:[#allocation38_spill]] }
   0x7   : > { %p2242_p4 = scmp.eq.s32.totalorder %s2476_s22, 0 }
   0x8   : > { %p2484_p3 = pnand %p2075_p0, %p400_p1 }
   0xa   : > { %p2238_p5 = pneg %p2484_p3 }
   0xc   : > { %s431_s25 = sshll.u32 %s3337_s6, 4  ;;  %p2239_p6 = pnand %p2242_p4, %p2238_p5  ;;  %s432_s25 = int_to_ptr.vmem [resolvable:$true] %s431_s25 }
   0xd   : > { %s2352_s27 = scalar_lea.vmem %s432_s25, 64  ;;  %p2360_p11 = scmp.lt.s32.totalorder %s432_s25, %s432_s25 }
   0xe   : > { %p2353_p7 = scmp.ne.s32.totalorder %s432_s25, %s2352_s27  ;;  %p2354_p8 = pneg %p2239_p6 }
   0xf   : > { %p2361_p12 = scmp.lt.s32.totalorder %s2352_s27, %s2352_s27 }
  0x10   : > { %p2355_p9 = pnand %p2354_p8, %p2353_p7 }
  0x11   : > { %p2362_p13 = por %p2361_p12, %p2360_p11 }
  0x12   : > { %p2356_p10 = pneg %p2355_p9 }
  0x14   : > { %p2363_p2 = pnand %p2362_p13, %p2356_p10 }
  0x16   : > { %2366 = shalt.err (!%p2363_p2)
}
  0x17   : > { %s2379_s28 = smov [#allocation2]   ;;  %459 = sbr.rel (%p2484_p3) target bundleno = 1510 (0x5e6), region = 56 }
  0x18   : > { %2241 = dma.vmem_to_smem (!%p2239_p6), %s432_s25, 64, %s2379_s28, [#allocation3]  }
  0x1e   : > { %2372 = dma.done.wait (%p2242_p4), [#allocation3], 64  }
  0x1f   : > { %2374 = vsyncadd (%p2242_p4), [#allocation3], 4294967232 }
  0x20   : > { %465 = sfence }
  0x21   : > { %p509_p0 = scmp.lt.s32.totalorder %s2476_s22, 3  ;;  %s3339_s7 = sld [smem:[#allocation39_spill]] }
  0x22   : > { %p3340_p1 = scmp.ne.s32.totalorder %s2476_s22, 0 }
  0x23   : > { %s510_s29 = scalar_select %p509_p0, %s2476_s22, 3 }
  0x24   : > { %521 = sbr.rel (%p3340_p1) target bundleno = 53 (0x35), region = 64  ;;  %s3341_s27 = sld [smem:[#allocation37_spill]] (!%p3340_p1)  ;;  %v524_v1 = vld [vmem:[%s3281_s1] sm:$0xff] (!%p3340_p1)  ;;  %v525_v2 = vld [vmem:[%s3281_s1 + $0x8] sm:$0xff] (!%p3340_p1)  ;;  %v2380_v6 = vmov (!%p3340_p1), 0.0  }
  0x25   : > { %s2233_s30 = smul.u32 80, %s510_s29  ;;  %s2081_s0 = sshll.u32 %s510_s29, 3  ;;  %528 = vst [vmem:[%s3290_s10] sm:$0xff] (!%p3340_p1), %v524_v1  ;;  %529 = vst [vmem:[%s3290_s10 + $0x8] sm:$0xff] (!%p3340_p1), %v525_v2  ;;  %v532_v5 = vld [vmem:[%s3282_s2] sm:$0xff] (!%p3340_p1)  ;;  %v537_v9 = vld [vmem:[%s3284_s4 + $0x8] sm:$0xff] (!%p3340_p1) }
  0x26   : > { %s2504_s19 = scalar_lea.vmem %s3288_s8, %s2081_s0  ;;  %552 = vst [vmem:[%s3295_s15] sm:$0xff] (!%p3340_p1), %v2380_v6  ;;  %553 = vst [vmem:[%s3295_s15 + $0x8] sm:$0xff] (!%p3340_p1), %v2380_v6  ;;  %v534_v7 = vld [vmem:[%s3283_s3] sm:$0xff] (!%p3340_p1) }
  0x27   : > { %s2509_s24 = scalar_lea.vmem %s3339_s7, %s2233_s30  ;;  %554 = vst [vmem:[%s3295_s15 + $0x10] sm:$0xff] (!%p3340_p1), %v2380_v6  ;;  %555 = vst [vmem:[%s3295_s15 + $0x18] sm:$0xff] (!%p3340_p1), %v2380_v6  ;;  %v536_v8 = vld [vmem:[%s3284_s4] sm:$0xff] (!%p3340_p1) }
  0x28   : > { %556 = vst [vmem:[%s3296_s16] sm:$0x1] (!%p3340_p1), %v2380_v6  ;;  %533 = vst [vmem:[%s3291_s11] sm:$0xff] (!%p3340_p1), %v532_v5  ;;  %v544_v12 = vld [vmem:[%s3285_s5] sm:$0xff] (!%p3340_p1) }
  0x29   : > { %535 = vst [vmem:[%s3292_s12] sm:$0xff] (!%p3340_p1), %v534_v7  ;;  %540 = vst [vmem:[%s3293_s13] sm:$0xff] (!%p3340_p1), %v536_v8 }
  0x2a   : > { %v522_v0 = vld [vmem:[%s3341_s27] sm:$0xff] (!%p3340_p1)  ;;  %541 = vst [vmem:[%s3293_s13 + $0x8] sm:$0xff] (!%p3340_p1), %v537_v9  ;;  %548 = vst [vmem:[%s3294_s14] sm:$0xff] (!%p3340_p1), %v544_v12 }
  0x2b   : > { %523 = vst [vmem:[%s3289_s9] sm:$0xff] %v522_v0 }
  0x2c   : > { %v526_v3 = vld [vmem:[%s3281_s1 + $0x10] sm:$0xff]  ;;  %v527_v4 = vld [vmem:[%s3281_s1 + $0x18] sm:$0xff] }
  0x2d   : > { %530 = vst [vmem:[%s3290_s10 + $0x10] sm:$0xff] %v526_v3  ;;  %531 = vst [vmem:[%s3290_s10 + $0x18] sm:$0xff] %v527_v4 }
  0x31   : > { %v538_v10 = vld [vmem:[%s3284_s4 + $0x10] sm:$0xff]  ;;  %v539_v11 = vld [vmem:[%s3284_s4 + $0x18] sm:$0xff]  ;;  %v545_v13 = vld [vmem:[%s3285_s5 + $0x8] sm:$0xff] }
  0x32   : > { %542 = vst [vmem:[%s3293_s13 + $0x10] sm:$0xff] %v538_v10  ;;  %543 = vst [vmem:[%s3293_s13 + $0x18] sm:$0xff] %v539_v11  ;;  %v546_v14 = vld [vmem:[%s3285_s5 + $0x10] sm:$0xff]  ;;  %v547_v15 = vld [vmem:[%s3285_s5 + $0x18] sm:$0xff] }
  0x33   : > { %549 = vst [vmem:[%s3294_s14 + $0x8] sm:$0xff] %v545_v13  ;;  %550 = vst [vmem:[%s3294_s14 + $0x10] sm:$0xff] %v546_v14 }
  0x34   : > { %551 = vst [vmem:[%s3294_s14 + $0x18] sm:$0xff] %v547_v15 }
  0x35 PF: > { %v572_v16 = vld [vmem:[%s2504_s19] sm:$0xff]  ;;  %v2381_v18 = vmov 0   ;;  %v564_v19 = vld [vmem:[%s2509_s24 + $0x10] sm:$0xff]  ;;  %v563_v20 = vld [vmem:[%s2509_s24 + $0x8] sm:$0xff]  ;;  %v2382_v22 = vmov 0.0   ;;  %vm2383_vm0 = vmmov 0   ;;  %v573_v36 = vlaneseq }
  0x36   : > { %v562_v17 = vld [vmem:[%s2509_s24] sm:$0xff]  ;;  %2259 = vset.pattern.permute.xlu1 %v2381_v18  ;;  %2258 = vset.pattern.permute.xlu0 %v2381_v18  ;;  %v2631_v23 = vld [vmem:[%s3290_s10 + $0x8] sm:$0xff]  ;;  %v2636_v24 = vld [vmem:[%s3290_s10 + $0x10] sm:$0xff]  ;;  %vm641_vm1 = vcmask 261120   ;;  %vm787_vm2 = vcmask 64512   ;;  %vm1019_vm14 = vcmask 1041409  }
  0x37   : > { %636 = vperm.xlu1 %2259, %v572_v16   ;;  %576 = vperm.xlu0 %2258, %v562_v17   ;;  %v2625_v21 = vld [vmem:[%s3290_s10] sm:$0xff]  ;;  %3343 = vst [vmem:[#allocation6_spill] sm:$0xff] %v2631_v23  ;;  %3344 = vst [vmem:[#allocation7_spill] sm:$0xff] %v2636_v24  ;;  %v2641_v25 = vld [vmem:[%s3290_s10 + $0x18] sm:$0xff]  ;;  %v2663_v37 = vand.u32 127, %v573_v36  ;;  %v2735_v0 = vshrl.u32 %v573_v36, 7 }
  0x38   : > { %3342 = vst [vmem:[#allocation5_spill] sm:$0xff] %v2625_v21  ;;  %2169 = vmatprep.subr.mxu1 %v2382_v22  ;;  %3345 = vst [vmem:[#allocation8_spill] sm:$0xff] %v2641_v25  ;;  %v2205_v26 = vpack.c.bf16 %v2631_v23, %v2625_v21  ;;  %v2209_v27 = vpack.c.bf16 %v2641_v25, %v2636_v24  ;;  %v566_v29 = vld [vmem:[%s2509_s24 + $0x20] sm:$0xff]  ;;  %v565_v30 = vld [vmem:[%s2509_s24 + $0x18] sm:$0xff]  ;;  %2171 = vmatprep.mubr.msk.f32.mxu1 %vm2383_vm0, %v2382_v22  ;;  %v2384_v60 = vmov 1966171168  }
  0x39   : > { %v568_v31 = vld [vmem:[%s2509_s24 + $0x30] sm:$0xff]  ;;  %v567_v32 = vld [vmem:[%s2509_s24 + $0x28] sm:$0xff]  ;;  %v570_v33 = vld [vmem:[%s2509_s24 + $0x40] sm:$0xff]  ;;  %v868_v61 = vunpack.c.l.s4 %v2384_v60  ;;  %v2758_v10 = vsub.s32 0, %v2735_v0  ;;  %vm1021_vm15 = vcmask 1042434   ;;  %p2110_p2 = scmp.lt.s32.totalorder %s2476_s22, 2 }
  0x3a   : > { %2206 = vmatprep.subr.bf16.mxu0 %v2205_v26  ;;  %v569_v34 = vld [vmem:[%s2509_s24 + $0x38] sm:$0xff]  ;;  %v571_v35 = vld [vmem:[%s2509_s24 + $0x48] sm:$0xff] }
  0x3b   : > { %582 = vperm.xlu1 %2259, %v564_v19   ;;  %579 = vperm.xlu0 %2258, %v563_v20   ;;  %v869_v63 = vunpack.c.0.s8 %v868_v61 }
  0x3c   : > { %v2650_v28 = vld [vmem:[%s3289_s9] sm:$0xff]  ;;  %2208 = vmatpush3.bf16.msra.mxu0 %v2205_v26 }
  0x3d   : > { %3346 = vst [vmem:[#allocation9_spill] sm:$0xff] %v2650_v28  ;;  %2170 = vmatpush3.msra.mxu1 %v2650_v28  ;;  %2210 = vmatprep.subr.bf16.mxu0 %v2209_v27  ;;  %v872_v3 = vsub.s32 %v869_v63, %v2735_v0 }
  0x3f   : > { %588 = vperm.xlu1 %2259, %v566_v29   ;;  %585 = vperm.xlu0 %2258, %v565_v30  }
  0x40   : > { %2212 = vmatpush3.bf16.msra.mxu0 %v2209_v27 }
  0x41   : > { %2200 = vmatprep.subr.mxu0 %v2382_v22 }
  0x43   : > { %594 = vperm.xlu1 %2259, %v568_v31   ;;  %591 = vperm.xlu0 %2258, %v567_v32  }
  0x47   : > { %600 = vperm.xlu1 %2259, %v570_v33   ;;  %597 = vperm.xlu0 %2258, %v569_v34  }
  0x4b   : > { %603 = vperm.xlu0 %2258, %v571_v35  }
  0xb6   : > { %v637_v38 = vpop.permute.xlu1 %636  ;;  %v577_v39 = vpop.permute.xlu0 %576 }
  0xb7   : > { %vm638_vm3 = vcmp.eq.s32.totalorder %v637_v38, %v2663_v37  ;;  %vm605_vm4 = vcmp.eq.s32.totalorder %v577_v39, %v2663_v37 }
  0xb8   : > { %v2668_v40 = vsel %vm638_vm3, 1.0, %v2382_v22  ;;  %v2671_v41 = vsel %vm605_vm4, 1.0, %v2382_v22  ;;  %vm1027_vm3 = vcmask 1045509   ;;  %vm1029_vm4 = vcmask 1046534  }
  0xb9   : > { %2154 = vmatprep.mubr.msk.f32.mxu0 %vm641_vm1, %v2671_v41  ;;  %2172 = vmatmul.mubr.msk.f32.vlgmr.msra.gmra.mrb[0].mxu1 %vm787_vm2, %v2668_v40 }
  0xba   : > { %v583_v42 = vpop.permute.xlu1 %582  ;;  %v580_v43 = vpop.permute.xlu0 %579 }
  0xbb   : > { %vm607_vm5 = vcmp.eq.s32.totalorder %v583_v42, %v2663_v37  ;;  %vm606_vm6 = vcmp.eq.s32.totalorder %v580_v43, %v2663_v37 }
  0xbc   : > { %v2680_v44 = vsel %vm607_vm5, 1.0, %v2382_v22  ;;  %v2683_v45 = vsel %vm606_vm6, 1.0, %v2382_v22  ;;  %vm1031_vm5 = vcmask 1047559  }
  0xbd   : > { %2155 = vmatmul.mubr.msk.f32.vlgmr.msra.gmra.mrb[0].mxu0 %vm641_vm1, %v2683_v45 }
  0xbe   : > { %v589_v46 = vpop.permute.xlu1 %588  ;;  %v586_v47 = vpop.permute.xlu0 %585  ;;  %2157 = vmatprep.mubr.msk.f32.mxu0 %vm641_vm1, %v2680_v44 }
  0xbf   : > { %vm609_vm7 = vcmp.eq.s32.totalorder %v589_v46, %v2663_v37  ;;  %vm608_vm8 = vcmp.eq.s32.totalorder %v586_v47, %v2663_v37 }
  0xc0   : > { %v2692_v48 = vsel %vm609_vm7, 1.0, %v2382_v22  ;;  %v2695_v49 = vsel %vm608_vm8, 1.0, %v2382_v22 }
  0xc1   : > { %2158 = vmatmul.mubr.msk.f32.gmra.mrb[2].mxu0 %vm641_vm1, %v2695_v49 }
  0xc2   : > { %v595_v50 = vpop.permute.xlu1 %594  ;;  %v592_v51 = vpop.permute.xlu0 %591  ;;  %2160 = vmatprep.mubr.msk.f32.mxu0 %vm641_vm1, %v2692_v48 }
  0xc3   : > { %vm611_vm9 = vcmp.eq.s32.totalorder %v595_v50, %v2663_v37  ;;  %vm610_vm10 = vcmp.eq.s32.totalorder %v592_v51, %v2663_v37 }
  0xc4   : > { %v2704_v52 = vsel %vm611_vm9, 1.0, %v2382_v22  ;;  %v2707_v53 = vsel %vm610_vm10, 1.0, %v2382_v22 }
  0xc5   : > { %3347 = vst [vmem:[#allocation10_spill] sm:$0xff] %v2704_v52  ;;  %3348 = vst [vmem:[#allocation11_spill] sm:$0xff] %v2707_v53  ;;  %2161 = vmatmul.mubr.msk.f32.gmra.mrb[4].mxu0 %vm641_vm1, %v2707_v53 }
  0xc6   : > { %v601_v54 = vpop.permute.xlu1 %600  ;;  %v598_v55 = vpop.permute.xlu0 %597  ;;  %2163 = vmatprep.mubr.msk.f32.mxu0 %vm641_vm1, %v2704_v52 }
  0xc7   : > { %vm613_vm11 = vcmp.eq.s32.totalorder %v601_v54, %v2663_v37  ;;  %vm612_vm12 = vcmp.eq.s32.totalorder %v598_v55, %v2663_v37 }
  0xc8   : > { %v2716_v56 = vsel %vm613_vm11, 1.0, %v2382_v22  ;;  %v2719_v57 = vsel %vm612_vm12, 1.0, %v2382_v22 }
  0xc9   : > { %3349 = vst [vmem:[#allocation12_spill] sm:$0xff] %v2716_v56  ;;  %3350 = vst [vmem:[#allocation13_spill] sm:$0xff] %v2719_v57  ;;  %2164 = vmatmul.mubr.msk.f32.gmra.mrb[6].mxu0 %vm641_vm1, %v2719_v57 }
  0xca   : > { %v604_v58 = vpop.permute.xlu0 %603  ;;  %2166 = vmatprep.mubr.msk.f32.mxu0 %vm641_vm1, %v2716_v56 }
  0xcb   : > { %vm614_vm13 = vcmp.eq.s32.totalorder %v604_v58, %v2663_v37 }
  0xcc   : > { %v2727_v59 = vsel %vm614_vm13, 1.0, %v2382_v22 }
  0xcd   : > { %3351 = vst [vmem:[#allocation14_spill] sm:$0xff] %v2727_v59  ;;  %2167 = vmatmul.mubr.msk.f32.gmra.mrb[8].mxu0 %vm641_vm1, %v2727_v59  ;;  %vm1025_vm1 = vcmask 1044484  }
  0xce   : > { %2202 = vmatprep.mubr.msk.f32.mxu0 %vm2383_vm0, %v2382_v22  ;;  %vm1023_vm0 = vcmask 1043459  }
 0x18c   : > { %v2733_v62 = vpop.f32.mrb[0].mxu1 }
 0x18d   : > { %3352 = vst [vmem:[#allocation15_spill] sm:$0xff] %v2733_v62  ;;  %v2173_v1 = vpop.f32.mrb[1].mxu1 }
 0x190   : > { %v2737_v2 = vpop.f32.mrb[0].mxu0 }
 0x191   : > { %v2742_v4 = vmul.f32 %v2737_v2, %v2733_v62  ;;  %v2744_v5 = vpop.f32.mrb[1].mxu0 }
 0x192   : > { %3354 = vst [vmem:[#allocation17_spill] sm:$0xff] %v2744_v5  ;;  %v2748_v6 = vmul.f32 %v2733_v62, %v2744_v5  ;;  %v2752_v7 = vmul.f32 %v2737_v2, %v2744_v5 }
 0x193   : > { %3353 = vst [vmem:[#allocation16_spill] sm:$0xff] %v2742_v4 }
 0x194   : > { %3355 = vst [vmem:[#allocation18_spill] sm:$0xff] %v2748_v6  ;;  %3356 = vst [vmem:[#allocation19_spill] sm:$0xff] %v2752_v7  ;;  %v2754_v8 = vpop.f32.mrb[2].mxu0  ;;  %v873_v9 = vrot.slane %v2748_v6, %v872_v3  ;;  %v866_v11 = vcombine.high %v2748_v6, %v2748_v6 }
 0x195   : > { %3357 = vst [vmem:[#allocation20_spill] sm:$0xff] %v2754_v8  ;;  %v2762_v12 = vpop.f32.mrb[3].mxu0 }
 0x196   : > { %3358 = vst [vmem:[#allocation21_spill] sm:$0xff] %v2762_v12  ;;  %v889_v13 = vrot.slane %v873_v9, %v872_v3  ;;  %v881_v14 = vcombine.high %v873_v9, %v873_v9  ;;  %v880_v15 = vrot.slane %v866_v11, %v872_v3  ;;  %v2822_v9 = vsub.s32 %v2663_v37, %v2735_v0 }
 0x198   : > { %v2764_v16 = vpop.f32.mrb[4].mxu0  ;;  %v2767_v17 = vrot.slane %v889_v13, %v2758_v10  ;;  %v903_v18 = vrot.slane %v881_v14, %v872_v3  ;;  %v911_v19 = vcombine.high %v889_v13, %v889_v13  ;;  %v882_v20 = vcombine.high %v880_v15, %v880_v15  ;;  %3373 = vst [vmem:[#allocation36_spill] sm:$0xff] %v2822_v9 }
 0x199   : > { %3359 = vst [vmem:[#allocation22_spill] sm:$0xff] %v2764_v16  ;;  %v2769_v22 = vpop.f32.mrb[5].mxu0  ;;  %v896_v39 = vrot.slane %v880_v15, %v872_v3 }
 0x19a   : > { %3360 = vst [vmem:[#allocation23_spill] sm:$0xff] %v2767_v17  ;;  %3361 = vst [vmem:[#allocation24_spill] sm:$0xff] %v2769_v22  ;;  %v955_v26 = vmul.f32 %v2767_v17, %v2762_v12  ;;  %v2774_v27 = vrot.slane %v903_v18, %v2758_v10  ;;  %v913_v29 = vcombine.high %v903_v18, %v903_v18 }
 0x19b   : > { %v910_v30 = vrot.slane %v882_v20, %v872_v3  ;;  %v2784_v34 = vrot.slane %v911_v19, %v2758_v10  ;;  %v2802_v51 = vrot.slane %v896_v39, %v2758_v10  ;;  %v912_v55 = vcombine.high %v896_v39, %v896_v39 }
 0x19c   : > { %3362 = vst [vmem:[#allocation25_spill] sm:$0xff] %v2774_v27  ;;  %963 = vadd.xlane.f32.xlu1 %v955_v26  ;;  %v2776_v31 = vpop.f32.mrb[6].mxu0  ;;  %v956_v32 = vmul.f32 %v2754_v8, %v2774_v27  ;;  %v2781_v33 = vrot.slane %v913_v29, %v2758_v10 }
 0x19d   : > { %3363 = vst [vmem:[#allocation26_spill] sm:$0xff] %v2776_v31  ;;  %3365 = vst [vmem:[#allocation28_spill] sm:$0xff] %v2784_v34  ;;  %v2786_v35 = vpop.f32.mrb[7].mxu0  ;;  %v2791_v38 = vrot.slane %v910_v30, %v2758_v10  ;;  %v914_v42 = vcombine.high %v910_v30, %v910_v30  ;;  %v957_v46 = vmul.f32 %v2784_v34, %v2769_v22 }
 0x19e   : > { %3364 = vst [vmem:[#allocation27_spill] sm:$0xff] %v2781_v33  ;;  %3366 = vst [vmem:[#allocation29_spill] sm:$0xff] %v2786_v35  ;;  %965 = vadd.xlane.f32.xlu0 %v956_v32  ;;  %v958_v36 = vmul.f32 %v2764_v16, %v2781_v33  ;;  %v959_v58 = vmul.f32 %v2802_v51, %v2786_v35  ;;  %v2812_v61 = vrot.slane %v912_v55, %v2758_v10 }
 0x19f   : > { %3367 = vst [vmem:[#allocation30_spill] sm:$0xff] %v2791_v38  ;;  %v960_v50 = vmul.f32 %v2776_v31, %v2791_v38  ;;  %3370 = vst [vmem:[#allocation33_spill] sm:$0xff] %v2802_v51  ;;  %v2805_v54 = vrot.slane %v914_v42, %v2758_v10 }
 0x1a0   : > { %969 = vadd.xlane.f32.xlu1 %v958_v36  ;;  %v2793_v43 = vpop.f32.mrb[8].mxu0  ;;  %3372 = vst [vmem:[#allocation35_spill] sm:$0xff] %v2812_v61 }
 0x1a1   : > { %3368 = vst [vmem:[#allocation31_spill] sm:$0xff] %v2793_v43  ;;  %v2797_v47 = vpop.f32.mrb[9].mxu0  ;;  %3371 = vst [vmem:[#allocation34_spill] sm:$0xff] %v2805_v54  ;;  %v962_v60 = vmul.f32 %v2793_v43, %v2805_v54 }
 0x1a2   : > { %3369 = vst [vmem:[#allocation32_spill] sm:$0xff] %v2797_v47  ;;  %967 = vadd.xlane.f32.xlu0 %v957_v46  ;;  %v961_v63 = vmul.f32 %v2812_v61, %v2797_v47 }
 0x1a4   : > { %973 = vadd.xlane.f32.xlu1 %v960_v50 }
 0x1a6   : > { %971 = vadd.xlane.f32.xlu0 %v959_v58 }
 0x1a8   : > { %977 = vadd.xlane.f32.xlu1 %v962_v60 }
 0x1aa   : > { %975 = vadd.xlane.f32.xlu0 %v961_v63 }
 0x229   : > { %v2816_v1 = vpop.xlane.xlu1 %963 }
 0x22a   : > { %v990_v15 = vrot.slane %v2816_v1, %v2822_v9  ;;  %vm1328_vm6 = vcmp.ge.f32.partialorder %v2816_v1, 0.0 }
 0x22b   : > { %v2818_v3 = vpop.xlane.xlu0 %965 }
 0x22c   : > { %v994_v13 = vrot.slane %v2818_v3, %v2822_v9  ;;  %vm1329_vm7 = vcmp.ge.f32.partialorder %v2818_v3, 0.0 }
 0x22d   : > { %v2824_v11 = vpop.xlane.xlu1 %969 }
 0x22e   : > { %v1020_v37 = vsel %vm1019_vm14, %v994_v13, %v990_v15  ;;  %v1002_v29 = vrot.slane %v2824_v11, %v2822_v9  ;;  %v3297_v15 = vsub.s32 1, %v2735_v0  ;;  %vm1331_vm8 = vcmp.ge.f32.partialorder %v2824_v11, 0.0 }
 0x22f   : > { %v2828_v14 = vpop.xlane.xlu0 %967 }
 0x230   : > { %v998_v18 = vrot.slane %v2828_v14, %v2822_v9  ;;  %vm1330_vm9 = vcmp.ge.f32.partialorder %v2828_v14, 0.0 }
 0x231   : > { %v2834_v19 = vpop.xlane.xlu1 %973 }
 0x232   : > { %v1022_v26 = vsel %vm1021_vm15, %v998_v18, %v1020_v37  ;;  %v1010_v46 = vrot.slane %v2834_v19, %v2822_v9  ;;  %v3299_v18 = vsub.s32 2, %v2735_v0  ;;  %v3301_v37 = vsub.s32 4, %v2735_v0 }
 0x233   : > { %v2837_v20 = vpop.xlane.xlu0 %971  ;;  %v1024_v32 = vsel %vm1023_vm0, %v1002_v29, %v1022_v26  ;;  %v3303_v26 = vsub.s32 3, %v2735_v0  ;;  %v3304_v29 = vsub.s32 6, %v2735_v0  ;;  %vm1333_vm10 = vcmp.ge.f32.partialorder %v2834_v19, 0.0 }
 0x234   : > { %v1006_v30 = vrot.slane %v2837_v20, %v2822_v9  ;;  %v1292_v62 = vmax.f32 %v2837_v20, 0.0  ;;  %vm1332_vm11 = vcmp.ge.f32.partialorder %v2837_v20, 0.0 }
 0x235   : > { %v2845_v36 = vpop.xlane.xlu1 %977 }
 0x236   : > { %v1026_v42 = vsel %vm1025_vm1, %v1006_v30, %v1024_v32  ;;  %v1018_v55 = vrot.slane %v2845_v36, %v2822_v9  ;;  %v1300_v59 = vsub.f32 0.0, %v1292_v62  ;;  %vm1335_vm12 = vcmp.ge.f32.partialorder %v2845_v36, 0.0 }
 0x237   : > { %v2847_v39 = vpop.xlane.xlu0 %975  ;;  %v1028_v58 = vsel %vm1027_vm3, %v1010_v46, %v1026_v42 }
 0x238   : > { %v1014_v50 = vrot.slane %v2847_v39, %v2822_v9  ;;  %v1294_v4 = vmax.f32 %v2847_v39, 0.0  ;;  %vm1334_vm13 = vcmp.ge.f32.partialorder %v2847_v39, 0.0 }
 0x23a   : > { %v1030_v60 = vsel %vm1029_vm4, %v1014_v50, %v1028_v58  ;;  %v3306_v50 = vsub.s32 7, %v2735_v0  ;;  %v1302_v57 = vsub.f32 0.0, %v1294_v4 }
 0x23b   : > { %v1032_v63 = vsel %vm1031_vm5, %v1018_v55, %v1030_v60 }
 0x23c   : > { %v1034_v13 = vsel %vm787_vm2, %v1032_v63, -inf }
 0x23d   : > { %1035 = vmax.xlane.f32.xlu0 %v1034_v13 }
 0x2ca   : > { %v1036_v30 = vpop.xlane.xlu0 %1035 }
 0x2cb   : > { %v1041_v32 = vrot.slane %v1036_v30, %v2758_v10  ;;  %v1045_v42 = vrot.slane %v1036_v30, %v3297_v15  ;;  %v1049_v46 = vrot.slane %v1036_v30, %v3299_v18  ;;  %v1057_v55 = vrot.slane %v1036_v30, %v3301_v37 }
 0x2cc   : > { %v1053_v58 = vrot.slane %v1036_v30, %v3303_v26  ;;  %v1065_v15 = vrot.slane %v1036_v30, %v3304_v29  ;;  %v3374_v37 = vsub.s32 5, %v2735_v0  ;;  %v1069_v29 = vrot.slane %v1036_v30, %v3306_v50 }
 0x2cd   : > { %v1078_v60 = vsub.f32 %v2816_v1, %v1041_v32  ;;  %v1079_v63 = vsub.f32 %v2818_v3, %v1045_v42  ;;  %v1080_v13 = vsub.f32 %v2828_v14, %v1049_v46  ;;  %v1082_v28 = vsub.f32 %v2837_v20, %v1057_v55 }
 0x2ce   : > { %v1061_v24 = vrot.slane %v1036_v30, %v3374_v37  ;;  %v1081_v26 = vsub.f32 %v2824_v11, %v1053_v58  ;;  %v1084_v42 = vsub.f32 %v2847_v39, %v1065_v15  ;;  %v1085_v23 = vsub.f32 %v2845_v36, %v1069_v29 }
 0x2cf   : > { %v1086_v18 = vmul.f32 1.442695, %v1078_v60  ;;  %v1088_v25 = vmul.f32 1.442695, %v1079_v63  ;;  %v1090_v32 = vmul.f32 1.442695, %v1080_v13  ;;  %v862_v30 = vmul.f32 %v2737_v2, %v2748_v6 }
 0x2d0   : > { %v1094_v46 = vmul.f32 1.442695, %v1082_v28  ;;  %v1083_v55 = vsub.f32 %v2834_v19, %v1061_v24  ;;  %v1092_v60 = vmul.f32 1.442695, %v1081_v26  ;;  %v1098_v63 = vmul.f32 1.442695, %v1084_v42 }
 0x2d1   : > { %2260 = vpow2.f32 %v1086_v18 }
 0x2d2   : > { %2262 = vpow2.f32 %v1088_v25  ;;  %v1096_v37 = vmul.f32 1.442695, %v1083_v55  ;;  %v1100_v25 = vmul.f32 1.442695, %v1085_v23 }
 0x2d3   : > { %2264 = vpow2.f32 %v1090_v32 }
 0x2d4   : > { %2266 = vpow2.f32 %v1094_v46 }
 0x2d5   : > { %2268 = vpow2.f32 %v1092_v60 }
 0x2d6   : > { %2270 = vpow2.f32 %v1098_v63 }
 0x2d7   : > { %2272 = vpow2.f32 %v1096_v37 }
 0x2d8   : > { %2274 = vpow2.f32 %v1100_v25 }
 0x2db   : > { %v2890_v18 = vpop.eup %2260 }
 0x2dc   : > { %v2892_v58 = vpop.eup %2262  ;;  %1111 = vperm.xlu1 %2259, %v2890_v18  }
 0x2dd   : > { %1114 = vperm.xlu0 %2258, %v2892_v58   ;;  %v2896_v24 = vpop.eup %2264 }
 0x2de   : > { %v2898_v28 = vpop.eup %2266 }
 0x2df   : > { %v2902_v15 = vpop.eup %2268 }
 0x2e0   : > { %1117 = vperm.xlu1 %2259, %v2896_v24   ;;  %v2904_v26 = vpop.eup %2270 }
 0x2e1   : > { %1123 = vperm.xlu0 %2258, %v2898_v28   ;;  %v2908_v23 = vpop.eup %2272 }
 0x2e2   : > { %v2911_v29 = vpop.eup %2274 }
 0x2e4   : > { %1120 = vperm.xlu1 %2259, %v2902_v15  }
 0x2e5   : > { %1129 = vperm.xlu0 %2258, %v2904_v26  }
 0x2e8   : > { %1126 = vperm.xlu1 %2259, %v2908_v23  }
 0x2ec   : > { %1132 = vperm.xlu1 %2259, %v2911_v29  }
 0x310   : > { %863 = vadd.xlane.f32.xlu1 %v862_v30 }
 0x35b   : > { %v1112_v13 = vpop.permute.xlu1 %1111 }
 0x35c   : > { %v1115_v32 = vpop.permute.xlu0 %1114  ;;  %v1137_v55 = vrot.slane %v1112_v13, %v2822_v9 }
 0x35d   : > { %v1141_v46 = vrot.slane %v1115_v32, %v2822_v9 }
 0x35f   : > { %v1118_v42 = vpop.permute.xlu1 %1117  ;;  %v1166_v25 = vsel %vm1019_vm14, %v1141_v46, %v1137_v55 }
 0x360   : > { %v1145_v60 = vrot.slane %v1118_v42, %v2822_v9  ;;  %v1124_v63 = vpop.permute.xlu0 %1123 }
 0x361   : > { %v1153_v30 = vrot.slane %v1124_v63, %v2822_v9 }
 0x362   : > { %v1167_v21 = vsel %vm1021_vm15, %v1145_v60, %v1166_v25 }
 0x363   : > { %v1121_v37 = vpop.permute.xlu1 %1120 }
 0x364   : > { %v1149_v50 = vrot.slane %v1121_v37, %v2822_v9  ;;  %v1130_v54 = vpop.permute.xlu0 %1129  ;;  %v1243_v37 = vand.u32 2147483647, %v2824_v11 }
 0x365   : > { %v1161_v38 = vrot.slane %v1130_v54, %v2822_v9  ;;  %v1242_v54 = vand.u32 2147483647, %v2828_v14 }
 0x366   : > { %v1168_v2 = vsel %vm1023_vm0, %v1149_v50, %v1167_v21  ;;  %v1240_v50 = vand.u32 2147483647, %v2816_v1 }
 0x367   : > { %v1127_v61 = vpop.permute.xlu1 %1126  ;;  %v1169_v13 = vsel %vm1025_vm1, %v1153_v30, %v1168_v2  ;;  %v1245_v2 = vand.u32 2147483647, %v2834_v19  ;;  %v1251_v30 = vsub.f32 0.0, %v1243_v37 }
 0x368   : > { %v1157_v32 = vrot.slane %v1127_v61, %v2822_v9  ;;  %v1241_v61 = vand.u32 2147483647, %v2818_v3  ;;  %v1248_v63 = vsub.f32 0.0, %v1240_v50  ;;  %v1247_v50 = vand.u32 2147483647, %v2845_v36 }
 0x36a   : > { %v1170_v42 = vsel %vm1027_vm3, %v1157_v32, %v1169_v13  ;;  %v1249_v25 = vsub.f32 0.0, %v1241_v61  ;;  %v1250_v32 = vsub.f32 0.0, %v1242_v54  ;;  %v1244_v13 = vand.u32 2147483647, %v2837_v20 }
 0x36b   : > { %v1133_v51 = vpop.permute.xlu1 %1132  ;;  %v1171_v55 = vsel %vm1029_vm4, %v1161_v38, %v1170_v42  ;;  %v1253_v42 = vsub.f32 0.0, %v1245_v2  ;;  %v1255_v37 = vsub.f32 0.0, %v1247_v50 }
 0x36c   : > { %v1165_v46 = vrot.slane %v1133_v51, %v2822_v9  ;;  %v1256_v51 = vmul.f32 1.442695, %v1248_v63  ;;  %v1258_v38 = vmul.f32 1.442695, %v1249_v25 }
 0x36d   : > { %v1266_v61 = vmul.f32 1.442695, %v1253_v42  ;;  %v1270_v54 = vmul.f32 1.442695, %v1255_v37 }
 0x36e   : > { %v1172_v60 = vsel %vm1031_vm5, %v1165_v46, %v1171_v55  ;;  %v1246_v46 = vand.u32 2147483647, %v2847_v39  ;;  %2276 = vpow2.f32 %v1256_v51  ;;  %v1262_v55 = vmul.f32 1.442695, %v1251_v30  ;;  %v3384_v39 = vld [vmem:[#allocation13_spill] sm:$0xff] }
 0x36f   : > { %v1174_v21 = vsel %vm787_vm2, %v1172_v60, 0.0  ;;  %2278 = vpow2.f32 %v1258_v38  ;;  %v1260_v60 = vmul.f32 1.442695, %v1250_v32 }
 0x370   : > { %1175 = vadd.xlane.f32.xlu0 %v1174_v21  ;;  %v1252_v21 = vsub.f32 0.0, %v1244_v13  ;;  %v1254_v9 = vsub.f32 0.0, %v1246_v46  ;;  %2280 = vpow2.f32 %v1262_v55 }
 0x371   : > { %2282 = vpow2.f32 %v1260_v60 }
 0x372   : > { %v1264_v63 = vmul.f32 1.442695, %v1252_v21  ;;  %2284 = vpow2.f32 %v1266_v61  ;;  %v1268_v25 = vmul.f32 1.442695, %v1254_v9 }
 0x374   : > { %2286 = vpow2.f32 %v1264_v63 }
 0x375   : > { %2288 = vpow2.f32 %v1268_v25 }
 0x376   : > { %2290 = vpow2.f32 %v1270_v54 }
 0x378   : > { %v2277_v2 = vpop.eup %2276 }
 0x379   : > { %v2279_v33 = vpop.eup %2278  ;;  %v1272_v51 = vadd.f32 1.0, %v2277_v2 }
 0x37a   : > { %v2281_v30 = vpop.eup %2280  ;;  %v1273_v38 = vadd.f32 1.0, %v2279_v33 }
 0x37b   : > { %v2283_v32 = vpop.eup %2282  ;;  %v1275_v42 = vadd.f32 1.0, %v2281_v30  ;;  %2292 = vrcp.f32 %v1272_v51 }
 0x37c   : > { %v2940_v13 = vpop.eup %2284  ;;  %v1274_v46 = vadd.f32 1.0, %v2283_v32  ;;  %2294 = vrcp.f32 %v1273_v38 }
 0x37d   : > { %2296 = vlog2.f32 %v1272_v51  ;;  %v1277_v9 = vadd.f32 1.0, %v2940_v13  ;;  %v1288_v51 = vmax.f32 %v2816_v1, 0.0 }
 0x37e   : > { %v2942_v55 = vpop.eup %2286  ;;  %2298 = vlog2.f32 %v1273_v38 }
 0x37f   : > { %v2945_v60 = vpop.eup %2288  ;;  %2300 = vrcp.f32 %v1275_v42  ;;  %v1276_v21 = vadd.f32 1.0, %v2942_v55  ;;  %v2958_v6 = vsub.f32 0.0, %v1288_v51 }
 0x380   : > { %2302 = vrcp.f32 %v1274_v46  ;;  %v2948_v50 = vpop.eup %2290  ;;  %v1278_v61 = vadd.f32 1.0, %v2945_v60 }
 0x381   : > { %2304 = vlog2.f32 %v1274_v46  ;;  %v1279_v63 = vadd.f32 1.0, %v2948_v50  ;;  %v1289_v46 = vmax.f32 %v2818_v3, 0.0 }
 0x382   : > { %2306 = vrcp.f32 %v1277_v9 }
 0x383   : > { %2308 = vlog2.f32 %v1275_v42  ;;  %v1290_v42 = vmax.f32 %v2828_v14, 0.0  ;;  %v2969_v51 = vsub.f32 0.0, %v1289_v46  ;;  %v3379_v14 = vsub.s32 4, %v2735_v0 }
 0x384   : > { %2310 = vlog2.f32 %v1276_v21 }
 0x385   : > { %v2293_v37 = vpop.eup %2292  ;;  %2312 = vlog2.f32 %v1277_v9  ;;  %v1291_v9 = vmax.f32 %v2824_v11, 0.0  ;;  %v2974_v12 = vsub.f32 0.0, %v1290_v42  ;;  %v3375_v11 = vsub.s32 1, %v2735_v0 }
 0x386   : > { %v2295_v25 = vpop.eup %2294  ;;  %2314 = vlog2.f32 %v1278_v61  ;;  %v1336_v47 = vmul.f32 %v2293_v37, %v2277_v2 }
 0x387   : > { %v2297_v38 = vpop.eup %2296  ;;  %v1337_v7 = vmul.f32 %v2295_v25, %v2279_v33  ;;  %v2976_v33 = vsub.f32 0.0, %v1291_v9  ;;  %v3381_v9 = vsub.s32 6, %v2735_v0 }
 0x388   : > { %v2299_v34 = vpop.eup %2298  ;;  %v2967_v35 = vmul.f32 0.6931472, %v2297_v38 }
 0x389   : > { %v2301_v27 = vpop.eup %2300  ;;  %v2971_v16 = vmul.f32 0.6931472, %v2299_v34  ;;  %v1345_v38 = vsel %vm1329_vm7, %v2295_v25, %v1337_v7  ;;  %v1344_v34 = vsel %vm1328_vm6, %v2293_v37, %v1336_v47  ;;  %vm1627_vm7 = vcmask 654336  }
 0x38a   : > { %v2303_v17 = vpop.eup %2302  ;;  %v1339_v31 = vmul.f32 %v2301_v27, %v2281_v30  ;;  %v1320_v42 = vsub.f32 %v2958_v6, %v2967_v35 }
 0x38b   : > { %v2305_v5 = vpop.eup %2304  ;;  %v1338_v8 = vmul.f32 %v2303_v17, %v2283_v32  ;;  %v1321_v62 = vsub.f32 %v2969_v51, %v2971_v16  ;;  %v3377_v16 = vsub.s32 2, %v2735_v0 }
 0x38c   : > { %v2965_v43 = vpop.eup %2306  ;;  %v1347_v32 = vsel %vm1331_vm8, %v2301_v27, %v1339_v31 }
 0x38d   : > { %v2309_v22 = vpop.eup %2308  ;;  %v1346_v7 = vsel %vm1330_vm9, %v2303_v17, %v1338_v8  ;;  %v1341_v47 = vmul.f32 %v2965_v43, %v2940_v13  ;;  %v3378_v8 = vsub.s32 5, %v2735_v0  ;;  %v3380_v13 = vsub.s32 7, %v2735_v0 }
 0x38e   : > { %v2311_v2 = vpop.eup %2310  ;;  %v1311_v1 = vmul.f32 0.6931472, %v2309_v22 }
 0x38f   : > { %v2313_v30 = vpop.eup %2312  ;;  %v1313_v3 = vmul.f32 0.6931472, %v2311_v2 }
 0x390   : > { %v2315_v52 = vpop.eup %2314 }
 0x3fd   : > { %v1176_v54 = vpop.xlane.xlu0 %1175 }
 0x3fe   : > { %2316 = vrcp.f32 %v1176_v54  ;;  %v1293_v54 = vmax.f32 %v2834_v19, 0.0 }
 0x3ff   : > { %2318 = vlog2.f32 %v1279_v63 }
 0x400   : > { %2320 = vrcp.f32 %v1276_v21  ;;  %v1295_v21 = vmax.f32 %v2845_v36, 0.0  ;;  %v1301_v56 = vsub.f32 0.0, %v1293_v54  ;;  %v3383_v36 = vld [vmem:[#allocation10_spill] sm:$0xff] }
 0x401   : > { %2322 = vrcp.f32 %v1279_v63  ;;  %v1309_v63 = vmul.f32 0.6931472, %v2305_v5  ;;  %v3376_v5 = vsub.s32 3, %v2735_v0 }
 0x402   : > { %2324 = vrcp.f32 %v1278_v61  ;;  %v1303_v46 = vsub.f32 0.0, %v1295_v21 }
 0x408   : > { %v2317_v4 = vpop.eup %2316 }
 0x409   : > { %v2319_v61 = vpop.eup %2318  ;;  %v1186_v27 = vrot.slane %v2317_v4, %v3375_v11  ;;  %v1182_v31 = vrot.slane %v2317_v4, %v2758_v10  ;;  %v1194_v6 = vrot.slane %v2317_v4, %v3376_v5  ;;  %v1190_v35 = vrot.slane %v2317_v4, %v3377_v16 }
 0x40a   : > { %v2321_v37 = vpop.eup %2320  ;;  %v1202_v17 = vrot.slane %v2317_v4, %v3378_v8  ;;  %v1198_v22 = vrot.slane %v2317_v4, %v3379_v14  ;;  %v1210_v25 = vrot.slane %v2317_v4, %v3380_v13  ;;  %v1206_v54 = vrot.slane %v2317_v4, %v3381_v9 }
 0x40b   : > { %v1220_v10 = vmul.f32 %v2892_v58, %v1186_v27  ;;  %v1219_v21 = vmul.f32 %v2890_v18, %v1182_v31  ;;  %v1222_v51 = vmul.f32 %v2902_v15, %v1194_v6  ;;  %v1221_v2 = vmul.f32 %v2896_v24, %v1190_v35  ;;  %v2323_v24 = vpop.eup %2322 }
 0x40c   : > { %v1322_v11 = vsub.f32 %v2974_v12, %v1309_v63  ;;  %v1315_v5 = vmul.f32 0.6931472, %v2313_v30  ;;  %v1317_v16 = vmul.f32 0.6931472, %v2315_v52  ;;  %v1319_v8 = vmul.f32 0.6931472, %v2319_v61  ;;  %v2325_v63 = vpop.eup %2324 }
 0x40d   : > { %v1451_v14 = vmul.f32 0.0625, %v1220_v10  ;;  %v1450_v53 = vmul.f32 0.0625, %v1219_v21  ;;  %v1224_v13 = vmul.f32 %v2908_v23, %v1202_v17  ;;  %v1340_v0 = vmul.f32 %v2321_v37, %v2942_v55 }
 0x40e   : > { %v1223_v4 = vmul.f32 %v2898_v28, %v1198_v22  ;;  %v1226_v58 = vmul.f32 %v2911_v29, %v1210_v25  ;;  %v1225_v18 = vmul.f32 %v2904_v26, %v1206_v54  ;;  %v1323_v15 = vsub.f32 %v2976_v33, %v1311_v1  ;;  %v3388_v54 = vld [vmem:[#allocation20_spill] sm:$0xff] }
 0x40f   : > { %v1459_v27 = vmul.f32 %v1451_v14, %v1345_v38  ;;  %v1458_v12 = vmul.f32 %v1450_v53, %v1344_v34  ;;  %v1453_v30 = vmul.f32 0.0625, %v1222_v51  ;;  %v1452_v52 = vmul.f32 0.0625, %v1221_v2  ;;  %v3389_v14 = vld [vmem:[#allocation24_spill] sm:$0xff] }
 0x410   : > { %v1324_v61 = vsub.f32 %v1300_v59, %v1313_v3  ;;  %v1325_v31 = vsub.f32 %v1301_v56, %v1315_v5  ;;  %v1326_v6 = vsub.f32 %v1302_v57, %v1317_v16  ;;  %v1327_v23 = vsub.f32 %v1303_v46, %v1319_v8 }
 0x411   : > { %1473 = vperm.xlu1 %2259, %v1459_v27   ;;  %1468 = vperm.xlu0 %2258, %v1458_v12   ;;  %v1455_v55 = vmul.f32 0.0625, %v1224_v13  ;;  %v1352_v28 = vmul.f32 %v1320_v42, %v1219_v21  ;;  %v1354_v35 = vmul.f32 %v1322_v11, %v1221_v2  ;;  %v1355_v29 = vmul.f32 %v1323_v15, %v1222_v51 }
 0x412   : > { %v1356_v17 = vmul.f32 %v1324_v61, %v1223_v4  ;;  %v1357_v26 = vmul.f32 %v1325_v31, %v1224_v13  ;;  %v1358_v22 = vmul.f32 %v1326_v6, %v1225_v18  ;;  %v1359_v33 = vmul.f32 %v1327_v23, %v1226_v58  ;;  %v3391_v61 = vld [vmem:[#allocation29_spill] sm:$0xff]  ;;  %v3392_v23 = vld [vmem:[#allocation26_spill] sm:$0xff] }
 0x413   : > { %v1461_v1 = vmul.f32 %v1453_v30, %v1347_v32  ;;  %v1460_v38 = vmul.f32 %v1452_v52, %v1346_v7  ;;  %v1454_v53 = vmul.f32 0.0625, %v1223_v4  ;;  %v1353_v34 = vmul.f32 %v1321_v62, %v1220_v10 }
 0x414   : > { %v1349_v56 = vsel %vm1333_vm10, %v2965_v43, %v1341_v47  ;;  %v1348_v57 = vsel %vm1332_vm11, %v2321_v37, %v1340_v0  ;;  %v1343_v59 = vmul.f32 %v2323_v24, %v2948_v50  ;;  %v1342_v46 = vmul.f32 %v2325_v63, %v2945_v60  ;;  %v3382_v43 = vld [vmem:[#allocation11_spill] sm:$0xff]  ;;  %v3385_v60 = vld [vmem:[#allocation12_spill] sm:$0xff]  ;;  %v3386_v50 = vld [vmem:[#allocation14_spill] sm:$0xff] }
 0x415   : > { %1483 = vperm.xlu1 %2259, %v1461_v1   ;;  %1478 = vperm.xlu0 %2258, %v1460_v38   ;;  %v1463_v42 = vmul.f32 %v1455_v55, %v1349_v56  ;;  %v1462_v3 = vmul.f32 %v1454_v53, %v1348_v57  ;;  %v1457_v25 = vmul.f32 0.0625, %v1226_v58  ;;  %v1456_v32 = vmul.f32 0.0625, %v1225_v18  ;;  %v3387_v37 = vld [vmem:[#allocation21_spill] sm:$0xff]  ;;  %v3390_v0 = vld [vmem:[#allocation22_spill] sm:$0xff] }
 0x416   : > { %v1351_v19 = vsel %vm1335_vm12, %v2323_v24, %v1343_v59  ;;  %v1350_v62 = vsel %vm1334_vm13, %v2325_v63, %v1342_v46  ;;  %v3393_v46 = vld [vmem:[#allocation31_spill] sm:$0xff] }
 0x417   : > { %v1465_v20 = vmul.f32 %v1457_v25, %v1351_v19  ;;  %v1464_v7 = vmul.f32 %v1456_v32, %v1350_v62  ;;  %v3394_v19 = vld [vmem:[#allocation32_spill] sm:$0xff] }
 0x419   : > { %1493 = vperm.xlu1 %2259, %v1463_v42   ;;  %1488 = vperm.xlu0 %2258, %v1462_v3  }
 0x41d   : > { %1503 = vperm.xlu1 %2259, %v1465_v20   ;;  %1498 = vperm.xlu0 %2258, %v1464_v7  }
 0x43b   : > { %1595 = vxpose.xlu0.b32.start [1/10] (short) (narrow) %v2671_v41, 32 }
 0x43f   : > { %1596 = vxpose.xlu0.b32.cont [2/10] (short) (narrow) %v2683_v45, 32 }
 0x443   : > { %1597 = vxpose.xlu0.b32.cont [3/10] (short) (narrow) %v2680_v44, 32 }
 0x446   : > { %1725 = vxpose.xlu1.b32.start.end [1/1] (short) (narrow) %v2668_v40, 8  ;;  %v3036_v40 = vpop.xlane.xlu1 %863 }
 0x447   : > { %1598 = vxpose.xlu0.b32.cont [4/10] (short) (narrow) %v2695_v49, 32  ;;  %v1227_v41 = vand.u32 2147483647, %v3036_v40  ;;  %vm1237_vm6 = vcmp.ge.f32.partialorder %v3036_v40, 0.0 }
 0x449   : > { %v1228_v44 = vsub.f32 0.0, %v1227_v41 }
 0x44b   : > { %1599 = vxpose.xlu0.b32.cont [5/10] (short) (narrow) %v2692_v48, 32  ;;  %v1229_v45 = vmul.f32 1.442695, %v1228_v44 }
 0x44d   : > { %2326 = vpow2.f32 %v1229_v45 }
 0x44f   : > { %1600 = vxpose.xlu0.b32.cont [6/10] (short) (narrow) %v3382_v43, 32 }
 0x453   : > { %1601 = vxpose.xlu0.b32.cont [7/10] (short) (narrow) %v3383_v36, 32 }
 0x457   : > { %1602 = vxpose.xlu0.b32.cont [8/10] (short) (narrow) %v3384_v39, 32  ;;  %v2327_v48 = vpop.eup %2326 }
 0x458   : > { %v3047_v21 = vadd.f32 1.0, %v2327_v48 }
 0x45a   : > { %2328 = vrcp.f32 %v3047_v21 }
 0x45b   : > { %1603 = vxpose.xlu0.b32.cont [9/10] (short) (narrow) %v3385_v60, 32  ;;  %2330 = vlog2.f32 %v3047_v21 }
 0x45f   : > { %1604 = vxpose.xlu0.b32.end [10/10] (short) (narrow) %v3386_v50, 32 }
 0x464   : > { %1369 = vperm.xlu1 %2259, %v1352_v28   ;;  %v2329_v36 = vpop.eup %2328 }
 0x468   : > { %1375 = vperm.xlu1 %2259, %v1354_v35  }
 0x46c   : > { %1378 = vperm.xlu1 %2259, %v1355_v29  }
 0x470   : > { %1381 = vperm.xlu1 %2259, %v1356_v17  }
 0x474   : > { %1384 = vperm.xlu1 %2259, %v1357_v26  }
 0x478   : > { %1387 = vperm.xlu1 %2259, %v1358_v22  }
 0x47c   : > { %1390 = vperm.xlu1 %2259, %v1359_v33  }
 0x488   : > { %1372 = vperm.xlu0 %2258, %v1353_v34  }
 0x490   : > { %v3039_v49 = vpop.permute.xlu0 %1468  ;;  %v3041_v47 = vpop.permute.xlu1 %1473 }
 0x491   : > { %v1506_v9 = vmul.f32 %v3039_v49, %v3387_v37  ;;  %v1507_v10 = vmul.f32 %v3388_v54, %v3041_v47 }
 0x493   : > { %v1514_v51 = vrot.slane %v1506_v9, 4  ;;  %v1520_v2 = vrot.slane %v1507_v10, 4 }
 0x494   : > { %v3049_v11 = vpop.permute.xlu0 %1478  ;;  %v3051_v5 = vpop.permute.xlu1 %1483 }
 0x495   : > { %v1515_v16 = vadd.f32 %v1514_v51, %v1506_v9  ;;  %v1521_v8 = vadd.f32 %v1520_v2, %v1507_v10  ;;  %v1508_v13 = vmul.f32 %v3049_v11, %v3389_v14  ;;  %v1509_v4 = vmul.f32 %v3390_v0, %v3051_v5 }
 0x496   : > { %v1238_v10 = vmul.f32 %v2329_v36, %v2327_v48 }
 0x497   : > { %v1516_v58 = vrot.slane %v1515_v16, 2  ;;  %v1522_v18 = vrot.slane %v1521_v8, 2  ;;  %v1526_v15 = vrot.slane %v1508_v13, 4  ;;  %v1532_v24 = vrot.slane %v1509_v4, 4 }
 0x498   : > { %v3058_v27 = vpop.permute.xlu0 %1488  ;;  %v3060_v12 = vpop.permute.xlu1 %1493 }
 0x499   : > { %v1517_v30 = vadd.f32 %v1516_v58, %v1515_v16  ;;  %v1523_v52 = vadd.f32 %v1522_v18, %v1521_v8  ;;  %v1527_v63 = vadd.f32 %v1526_v15, %v1508_v13  ;;  %v1510_v31 = vmul.f32 %v3058_v27, %v3391_v61 }
 0x49a   : > { %v1533_v6 = vadd.f32 %v1532_v24, %v1509_v4  ;;  %v1511_v55 = vmul.f32 %v3392_v23, %v3060_v12  ;;  %v1239_v18 = vsel %vm1237_vm6, %v1238_v10, %v2329_v36 }
 0x49b   : > { %v1518_v28 = vrot.slane %v1517_v30, 1  ;;  %v1524_v35 = vrot.slane %v1523_v52, 1  ;;  %v1528_v29 = vrot.slane %v1527_v63, 2  ;;  %v1538_v17 = vrot.slane %v1510_v31, 4 }
 0x49c   : > { %v1534_v26 = vrot.slane %v1533_v6, 2  ;;  %v1544_v22 = vrot.slane %v1511_v55, 4  ;;  %v3066_v33 = vpop.permute.xlu1 %1503  ;;  %v3068_v1 = vpop.permute.xlu0 %1498  ;;  %v1449_v48 = vmul.f32 -0.0625, %v1239_v18 }
 0x49d   : > { %v1519_v38 = vadd.f32 %v1518_v28, %v1517_v30  ;;  %v1525_v53 = vadd.f32 %v1524_v35, %v1523_v52  ;;  %v1529_v34 = vadd.f32 %v1528_v29, %v1527_v63  ;;  %v1539_v56 = vadd.f32 %v1538_v17, %v1510_v31  ;;  %v3397_v35 = vld [vmem:[#allocation16_spill] sm:$0xff]  ;;  %v3398_v17 = vld [vmem:[#allocation15_spill] sm:$0xff] }
 0x49e   : > { %v1535_v57 = vadd.f32 %v1534_v26, %v1533_v6  ;;  %v1545_v59 = vadd.f32 %v1544_v22, %v1511_v55  ;;  %v1513_v42 = vmul.f32 %v3393_v46, %v3066_v33  ;;  %v1512_v62 = vmul.f32 %v3068_v1, %v3394_v19  ;;  %v3395_v6 = vld [vmem:[#allocation19_spill] sm:$0xff]  ;;  %v3396_v55 = vld [vmem:[#allocation17_spill] sm:$0xff]  ;;  %v3399_v22 = vld [vmem:[#allocation18_spill] sm:$0xff] }
 0x49f   : > { %v1572_v3 = vsel %vm1019_vm14, %v1525_v53, %v1519_v38  ;;  %v1530_v25 = vrot.slane %v1529_v34, 1  ;;  %v1540_v32 = vrot.slane %v1539_v56, 2  ;;  %v1583_v23 = vmul.f32 %v3395_v6, %v1449_v48  ;;  %v3400_v53 = vld [vmem:[#allocation23_spill] sm:$0xff] }
 0x4a0   : > { %v1536_v20 = vrot.slane %v1535_v57, 1  ;;  %v1546_v7 = vrot.slane %v1545_v59, 2  ;;  %v1556_v43 = vrot.slane %v1513_v42, 4  ;;  %v1550_v50 = vrot.slane %v1512_v62, 4  ;;  %v3403_v19 = vld [vmem:[#allocation27_spill] sm:$0xff] }
 0x4a1   : > { %v1531_v39 = vadd.f32 %v1530_v25, %v1529_v34  ;;  %v1541_v60 = vadd.f32 %v1540_v32, %v1539_v56  ;;  %v1563_v29 = vmul.f32 %v3397_v35, %v1449_v48  ;;  %v1586_v38 = vmul.f32 %v1449_v48, %v3399_v22  ;;  %v3401_v56 = vld [vmem:[#allocation25_spill] sm:$0xff]  ;;  %v3402_v25 = vld [vmem:[#allocation28_spill] sm:$0xff] }
 0x4a2   : > { %v1537_v41 = vadd.f32 %v1536_v20, %v1535_v57  ;;  %v1547_v44 = vadd.f32 %v1546_v7, %v1545_v59  ;;  %v1557_v45 = vadd.f32 %v1556_v43, %v1513_v42  ;;  %v1551_v54 = vadd.f32 %v1550_v50, %v1512_v62  ;;  %v3404_v7 = vld [vmem:[#allocation33_spill] sm:$0xff]  ;;  %v3405_v43 = vld [vmem:[#allocation30_spill] sm:$0xff] }
 0x4a3   : > { %v1573_v37 = vsel %vm1021_vm15, %v1531_v39, %v1572_v3  ;;  %v1542_v9 = vrot.slane %v1541_v60, 1  ;;  %v1587_v34 = vmul.f32 %v3039_v49, %v3400_v53  ;;  %v1588_v57 = vmul.f32 %v3041_v47, %v3401_v56  ;;  %v3406_v39 = vld [vmem:[#allocation34_spill] sm:$0xff] }
 0x4a4   : > { %v1574_v51 = vsel %vm1023_vm0, %v1537_v41, %v1573_v37  ;;  %v1548_v2 = vrot.slane %v1547_v44, 1  ;;  %v1558_v16 = vrot.slane %v1557_v45, 2  ;;  %v1552_v14 = vrot.slane %v1551_v54, 2 }
 0x4a5   : > { %v1543_v8 = vadd.f32 %v1542_v9, %v1541_v60  ;;  %v2217_v3 = vpack.c.bf16 %v1588_v57, %v1587_v34  ;;  %v1589_v32 = vmul.f32 %v3049_v11, %v3402_v25  ;;  %v1590_v62 = vmul.f32 %v3051_v5, %v3403_v19  ;;  %v3407_v60 = vld [vmem:[#allocation35_spill] sm:$0xff] }
 0x4a6   : > { %v1549_v13 = vadd.f32 %v1548_v2, %v1547_v44  ;;  %v1559_v0 = vadd.f32 %v1558_v16, %v1557_v45  ;;  %v1553_v58 = vadd.f32 %v1552_v14, %v1551_v54  ;;  %v1591_v49 = vmul.f32 %v3058_v27, %v3404_v7  ;;  %v3408_v2 = vld [vmem:[#allocation36_spill] sm:$0xff] }
 0x4a7   : > { %v1575_v4 = vsel %vm1025_vm1, %v1543_v8, %v1574_v51  ;;  %v2221_v20 = vpack.c.bf16 %v1590_v62, %v1589_v32  ;;  %v1592_v47 = vmul.f32 %v3060_v12, %v3405_v43  ;;  %v1594_v5 = vmul.f32 %v3066_v33, %v3406_v39  ;;  %v1837_v43 = vld [vmem:[%s3295_s15] sm:$0xff] (!%p2110_p2) }
 0x4a8   : > { %v1576_v15 = vsel %vm1027_vm3, %v1549_v13, %v1575_v4  ;;  %v1560_v24 = vrot.slane %v1559_v0, 1  ;;  %v1554_v30 = vrot.slane %v1553_v58, 1  ;;  %v1593_v50 = vmul.f32 %v3068_v1, %v3407_v60  ;;  %v1840_v60 = vld [vmem:[%s3295_s15 + $0x18] sm:$0xff] (!%p2110_p2) }
 0x4a9   : > { %v2225_v11 = vpack.c.bf16 %v1592_v47, %v1591_v49  ;;  %v1834_v49 = vld [vmem:[%s3296_s16] sm:$0x1] (!%p2110_p2)  ;;  %v1838_v47 = vld [vmem:[%s3295_s15 + $0x8] sm:$0xff] (!%p2110_p2) }
 0x4aa   : > { %v1561_v52 = vadd.f32 %v1560_v24, %v1559_v0  ;;  %v1555_v63 = vadd.f32 %v1554_v30, %v1553_v58  ;;  %v2229_v27 = vpack.c.bf16 %v1594_v5, %v1593_v50  ;;  %v1839_v5 = vld [vmem:[%s3295_s15 + $0x10] sm:$0xff] (!%p2110_p2) }
 0x4ac   : > { %v1577_v61 = vsel %vm1029_vm4, %v1555_v63, %v1576_v15 }
 0x4ad   : > { %v1578_v31 = vsel %vm1031_vm5, %v1561_v52, %v1577_v61 }
 0x4ae   : > { %v1584_v28 = vmul.f32 %v1578_v31, %v3396_v55  ;;  %v1580_v26 = vmul.f32 %v1578_v31, %v3398_v17 }
 0x4b0   : > { %v1585_v59 = vadd.f32 %v1584_v28, %v1583_v23  ;;  %v1581_v46 = vadd.f32 %v1580_v26, %v1563_v29  ;;  %v2331_v23 = vpop.eup %2330  ;;  %v1233_v28 = vmin.f32 %v3036_v40, 0.0 }
 0x4b1   : > { %v1235_v55 = vmul.f32 0.6931472, %v2331_v23 }
 0x4b2   : > { %2201 = vmatpush3.msra.mxu0 %v1585_v59  ;;  %v2213_v42 = vpack.c.bf16 %v1586_v38, %v1581_v46 }
 0x4b3   : > { %v1236_v35 = vsub.f32 %v1233_v28, %v1235_v55 }
 0x4b4   : > { %2214 = vmatprep.subr.bf16.mxu1 %v2213_v42 }
 0x4b5   : > { %2216 = vmatpush3.bf16.msra.mxu1 %v2213_v42  ;;  %v1435_v29 = vrot.slane %v1236_v35, 4 }
 0x4b6   : > { %2218 = vmatprep.subr.bf16.mxu1 %v2217_v3 }
 0x4b7   : > { %v1436_v17 = vadd.f32 %v1435_v29, %v1236_v35 }
 0x4b9   : > { %2220 = vmatpush3.bf16.msra.mxu1 %v2217_v3  ;;  %v1437_v34 = vrot.slane %v1436_v17, 2 }
 0x4ba   : > { %2222 = vmatprep.subr.bf16.mxu1 %v2221_v20 }
 0x4bb   : > { %v1611_v36 = vpop.trf.xlu0  ;;  %v1438_v42 = vadd.f32 %v1437_v34, %v1436_v17 }
 0x4bc   : > { %2194 = vmatprep.mubr.msk.f32.mxu1 %vm1627_vm7, %v1611_v36 }
 0x4bd   : > { %2224 = vmatpush3.bf16.msra.mxu1 %v2221_v20  ;;  %v1439_v25 = vrot.slane %v1438_v42, 1 }
 0x4be   : > { %2226 = vmatprep.subr.bf16.mxu1 %v2225_v11 }
 0x4bf   : > { %v1612_v41 = vpop.trf.xlu0  ;;  %v1440_v40 = vadd.f32 %v1439_v25, %v1438_v42 }
 0x4c1   : > { %2228 = vmatpush3.bf16.msra.mxu1 %v2225_v11 }
 0x4c2   : > { %2230 = vmatprep.subr.bf16.mxu1 %v2229_v27 }
 0x4c3   : > { %v1613_v12 = vpop.trf.xlu0 }
 0x4c5   : > { %2232 = vmatpush3.bf16.msra.mxu1 %v2229_v27 }
 0x4c6   : > { %v1741_v44 = vpop.trf.xlu1 }
 0x4c7   : > { %2203 = vmatmul.mubr.msk.f32.vlgmr.msra.gmra.mrb[10].mxu0 %vm787_vm2, %v1741_v44  ;;  %v1614_v45 = vpop.trf.xlu0 }
 0x4c8   : > { %2195 = vmatmul.mubr.msk.f32.vlgmr.msra.gmra.mrb[2].mxu1 %vm1627_vm7, %v1612_v41 }
 0x4c9   : > { %2197 = vmatprep.mubr.msk.f32.mxu1 %vm1627_vm7, %v1613_v12 }
 0x4cc   : > { %2198 = vmatmul.mubr.msk.f32.gmra.mrb[4].mxu1 %vm1627_vm7, %v1614_v45 }
 0x4e3   : > { %v1370_v33 = vpop.permute.xlu1 %1369 }
 0x4e4   : > { %v1395_v16 = vrot.slane %v1370_v33, %v3408_v2 }
 0x4e7   : > { %v1376_v1 = vpop.permute.xlu1 %1375 }
 0x4e8   : > { %v1403_v14 = vrot.slane %v1376_v1, %v3408_v2 }
 0x4eb   : > { %v1379_v37 = vpop.permute.xlu1 %1378 }
 0x4ec   : > { %v1407_v13 = vrot.slane %v1379_v37, %v3408_v2 }
 0x4ef   : > { %v1382_v9 = vpop.permute.xlu1 %1381 }
 0x4f0   : > { %v1411_v4 = vrot.slane %v1382_v9, %v3408_v2 }
 0x4f3   : > { %v1385_v54 = vpop.permute.xlu1 %1384 }
 0x4f4   : > { %v1415_v15 = vrot.slane %v1385_v54, %v3408_v2 }
 0x4f7   : > { %v1388_v10 = vpop.permute.xlu1 %1387 }
 0x4f8   : > { %v1419_v30 = vrot.slane %v1388_v10, %v3408_v2 }
 0x4fb   : > { %v1391_v58 = vpop.permute.xlu1 %1390 }
 0x4fc   : > { %v1423_v48 = vrot.slane %v1391_v58, %v3408_v2 }
 0x507   : > { %v1373_v51 = vpop.permute.xlu0 %1372 }
 0x508   : > { %v1399_v8 = vrot.slane %v1373_v51, %v3408_v2 }
 0x50a   : > { %v1424_v0 = vsel %vm1019_vm14, %v1399_v8, %v1395_v16 }
 0x50b   : > { %v1425_v18 = vsel %vm1021_vm15, %v1403_v14, %v1424_v0 }
 0x50c   : > { %v1426_v24 = vsel %vm1023_vm0, %v1407_v13, %v1425_v18 }
 0x50d   : > { %v1427_v52 = vsel %vm1025_vm1, %v1411_v4, %v1426_v24 }
 0x50e   : > { %v1428_v63 = vsel %vm1027_vm3, %v1415_v15, %v1427_v52 }
 0x50f   : > { %v1429_v61 = vsel %vm1029_vm4, %v1419_v30, %v1428_v63 }
 0x510   : > { %v1430_v31 = vsel %vm1031_vm5, %v1423_v48, %v1429_v61 }
 0x511   : > { %v1432_v6 = vsel %vm787_vm2, %v1430_v31, 0.0 }
 0x512   : > { %1433 = vadd.xlane.f32.xlu1 %v1432_v6 }
 0x59a   : > { %v3126_v26 = vpop.f32.mrb[10].mxu0 }
 0x59b   : > { %v2204_v22 = vpop.f32.mrb[11].mxu0  ;;  %v2196_v38 = vpop.f32.mrb[2].mxu1 }
 0x59c   : > { %v1706_v53 = vpop.f32.mrb[3].mxu1  ;;  %v1842_v39 = vadd.f32 (!%p2110_p2), %v2196_v38, %v1838_v47 }
 0x59d   : > { %v1841_v11 = vadd.f32 (!%p2110_p2), %v1837_v43, %v1706_v53 }
 0x59e   : > { %1846 = vst [vmem:[%s3295_s15 + $0x8] sm:$0xff] (!%p2110_p2), %v1842_v39 }
 0x59f   : > { %v1434_v56 = vpop.xlane.xlu1 %1433  ;;  %v2199_v59 = vpop.f32.mrb[4].mxu1  ;;  %1845 = vst [vmem:[%s3295_s15] sm:$0xff] (!%p2110_p2), %v1841_v11 }
 0x5a0   : > { %v1441_v57 = vrot.slane %v1434_v56, 4  ;;  %v1716_v46 = vpop.f32.mrb[5].mxu1  ;;  %v1844_v41 = vadd.f32 (!%p2110_p2), %v2199_v59, %v1840_v60 }
 0x5a1   : > { %v1843_v50 = vadd.f32 (!%p2110_p2), %v1839_v5, %v1716_v46 }
 0x5a2   : > { %v1442_v3 = vadd.f32 %v1441_v57, %v1434_v56  ;;  %1848 = vst [vmem:[%s3295_s15 + $0x18] sm:$0xff] (!%p2110_p2), %v1844_v41 }
 0x5a3   : > { %1847 = vst [vmem:[%s3295_s15 + $0x10] sm:$0xff] (!%p2110_p2), %v1843_v50 }
 0x5a4   : > { %v1443_v21 = vrot.slane %v1442_v3, 2 }
 0x5a6   : > { %v1444_v32 = vadd.f32 %v1443_v21, %v1442_v3 }
 0x5a8   : > { %v1445_v19 = vrot.slane %v1444_v32, 1  ;;  %1833 = sbr.rel (%p2110_p2) target bundleno = 1459 (0x5b3), region = 68 }
 0x5aa   : > { %v1446_v62 = vadd.f32 %v1445_v19, %v1444_v32 }
 0x5ac   : > { %v1447_v20 = vadd.f32 %v1446_v62, %v1440_v40 }
 0x5ae   : > { %v1448_v7 = vmul.f32 -0.0625, %v1447_v20 }
 0x5b0   : > { %v1835_v36 = vadd.f32 %v1834_v49, %v1448_v7 }
 0x5b2   : > { %1836 = vst [vmem:[%s3296_s16] sm:$0x1] %v1835_v36 }
 0x5b3 PF: > { %v1853_v27 = vld [vmem:[%s3293_s13] sm:$0xff]  ;;  %v1861_v12 = vmul.f32 0.1, %v1706_v53  ;;  %v1854_v44 = vld [vmem:[%s3293_s13 + $0x8] sm:$0xff]  ;;  %v1862_v45 = vmul.f32 0.1, %v2196_v38  ;;  %v1877_v33 = vmul.f32 %v1706_v53, %v1706_v53  ;;  %v1878_v1 = vmul.f32 %v2196_v38, %v2196_v38 }
 0x5b4   : > { %v1857_v37 = vmul.f32 0.9, %v1853_v27  ;;  %v1858_v9 = vmul.f32 0.9, %v1854_v44  ;;  %v1855_v54 = vld [vmem:[%s3293_s13 + $0x10] sm:$0xff]  ;;  %v1856_v10 = vld [vmem:[%s3293_s13 + $0x18] sm:$0xff]  ;;  %v1879_v51 = vmul.f32 %v1716_v46, %v1716_v46  ;;  %v1880_v14 = vmul.f32 %v2199_v59, %v2199_v59 }
 0x5b5   : > { %v1859_v2 = vmul.f32 0.9, %v1855_v54  ;;  %v1863_v16 = vmul.f32 0.1, %v1716_v46  ;;  %v1860_v8 = vmul.f32 0.9, %v1856_v10  ;;  %v1961_v48 = vmul.f32 %v3126_v26, %v3126_v26 }
 0x5b6   : > { %v3171_v13 = vadd.f32 %v1861_v12, %v1857_v37  ;;  %v3173_v0 = vadd.f32 %v1862_v45, %v1858_v9  ;;  %v1864_v4 = vmul.f32 0.1, %v2199_v59  ;;  %s2111_s25 = sshll.u32 %s2476_s22, 7  ;;  %v1869_v58 = vld [vmem:[%s3294_s14] sm:$0xff]  ;;  %v1881_v18 = vmul.f32 0.001, %v1877_v33 }
 0x5b7   : > { %v3179_v15 = vadd.f32 %v1863_v16, %v1859_v2  ;;  %s1851_s6 = sadd.s32 1, %s2111_s25  ;;  %v1873_v24 = vmul.f32 0.999, %v1869_v58  ;;  %v1870_v30 = vld [vmem:[%s3294_s14 + $0x8] sm:$0xff]  ;;  %v1882_v52 = vmul.f32 0.001, %v1878_v1 }
 0x5b8   : > { %1889 = vst [vmem:[%s3293_s13] sm:$0xff] %v3171_v13  ;;  %1890 = vst [vmem:[%s3293_s13 + $0x8] sm:$0xff] %v3173_v0  ;;  %v3196_v63 = vadd.f32 %v1864_v4, %v1860_v8  ;;  %s1852_s19 = sld [smem:[#allocation2 + %s1851_s6]]  ;;  %v1874_v61 = vmul.f32 0.999, %v1870_v30  ;;  %v1871_v31 = vld [vmem:[%s3294_s14 + $0x10] sm:$0xff]  ;;  %v1872_v28 = vld [vmem:[%s3294_s14 + $0x18] sm:$0xff] }
 0x5b9   : > { %v1883_v6 = vmul.f32 0.001, %v1879_v51  ;;  %1891 = vst [vmem:[%s3293_s13 + $0x10] sm:$0xff] %v3179_v15  ;;  %v1885_v23 = vadd.f32 %v1881_v18, %v1873_v24  ;;  %v1875_v55 = vmul.f32 0.999, %v1871_v31  ;;  %v1955_v22 = vld [vmem:[%s3291_s11] sm:$0xff] }
 0x5ba   : > { %v1884_v35 = vmul.f32 0.001, %v1880_v14  ;;  %1892 = vst [vmem:[%s3293_s13 + $0x18] sm:$0xff] %v3196_v63  ;;  %v1886_v29 = vadd.f32 %v1882_v52, %v1874_v61  ;;  %v1876_v17 = vmul.f32 0.999, %v1872_v28  ;;  %v1959_v53 = vld [vmem:[%s3292_s12] sm:$0xff] }
 0x5bb   : > { %v1957_v38 = vmul.f32 0.1, %v3126_v26  ;;  %1893 = vst [vmem:[%s3294_s14] sm:$0xff] %v1885_v23  ;;  %v1887_v34 = vadd.f32 %v1883_v6, %v1875_v55  ;;  %v1956_v56 = vmul.f32 0.9, %v1955_v22  ;;  %v1960_v57 = vmul.f32 0.999, %v1959_v53 }
 0x5bc   : > { %v1962_v59 = vmul.f32 0.001, %v1961_v48  ;;  %1894 = vst [vmem:[%s3294_s14 + $0x8] sm:$0xff] %v1886_v29  ;;  %v1888_v46 = vadd.f32 %v1884_v35, %v1876_v17 }
 0x5bd   : > { %1895 = vst [vmem:[%s3294_s14 + $0x10] sm:$0xff] %v1887_v34  ;;  %v3228_v26 = vadd.f32 %v1957_v38, %v1956_v56  ;;  %v3410_v38 = vld [vmem:[#allocation6_spill] sm:$0xff] }
 0x5be   : > { %v1963_v42 = vadd.f32 %v1962_v59, %v1960_v57  ;;  %v1902_v3 = vstv %s1852_s19  ;;  %1896 = vst [vmem:[%s3294_s14 + $0x18] sm:$0xff] %v1888_v46  ;;  %s1850_s19 = sld [smem:[#allocation2 + %s2111_s25]]  ;;  %v3413_v59 = vld [vmem:[#allocation9_spill] sm:$0xff] }
 0x5bf   : > { %v1903_v21 = vmul.f32 %v1902_v3, %v1885_v23  ;;  %v1904_v25 = vmul.f32 %v1902_v3, %v1886_v29  ;;  %v1905_v32 = vmul.f32 %v1902_v3, %v1887_v34  ;;  %1964 = vst [vmem:[%s3291_s11] sm:$0xff] %v3228_v26  ;;  %v1906_v19 = vmul.f32 %v1902_v3, %v1888_v46  ;;  %v3409_v29 = vld [vmem:[#allocation5_spill] sm:$0xff] }
 0x5c0   : > { %1965 = vst [vmem:[%s3292_s12] sm:$0xff] %v1963_v42  ;;  %v1967_v40 = vmul.f32 %v1963_v42, %v1902_v3 }
 0x5c1   : > { %2332 = vrsqrt.f32 %v1903_v21  ;;  %vm1909_vm2 = vcmp.eq.f32.partialorder %v1903_v21, inf  ;;  %vm1911_vm14 = vcmp.eq.f32.partialorder %v1903_v21, 0.0  ;;  %v1912_v20 = vand.u32 2147483648, %v1903_v21 }
 0x5c2   : > { %2334 = vrsqrt.f32 %v1904_v25  ;;  %vm1916_vm15 = vcmp.eq.f32.partialorder %v1904_v25, inf  ;;  %vm1918_vm0 = vcmp.eq.f32.partialorder %v1904_v25, 0.0  ;;  %v1919_v43 = vand.u32 2147483648, %v1904_v25 }
 0x5c3   : > { %2336 = vrsqrt.f32 %v1905_v32  ;;  %vm1923_vm1 = vcmp.eq.f32.partialorder %v1905_v32, inf  ;;  %vm1925_vm3 = vcmp.eq.f32.partialorder %v1905_v32, 0.0  ;;  %v1926_v11 = vand.u32 2147483648, %v1905_v32 }
 0x5c4   : > { %2338 = vrsqrt.f32 %v1906_v19  ;;  %vm1930_vm4 = vcmp.eq.f32.partialorder %v1906_v19, inf  ;;  %vm1932_vm5 = vcmp.eq.f32.partialorder %v1906_v19, 0.0  ;;  %v1933_v50 = vand.u32 2147483648, %v1906_v19 }
 0x5c5   : > { %2340 = vrsqrt.f32 %v1967_v40  ;;  %vm1970_vm8 = vcmp.eq.f32.partialorder %v1967_v40, inf  ;;  %vm1972_vm9 = vcmp.eq.f32.partialorder %v1967_v40, 0.0  ;;  %v1973_v37 = vand.u32 2147483648, %v1967_v40 }
 0x5c6   : > { %v1897_v18 = vstv %s1850_s19 }
 0x5c7   : > { %v1898_v24 = vmul.f32 %v1897_v18, %v3171_v13  ;;  %v1899_v30 = vmul.f32 %v1897_v18, %v3173_v0  ;;  %v1900_v52 = vmul.f32 %v1897_v18, %v3179_v15  ;;  %v1901_v61 = vmul.f32 %v1897_v18, %v3196_v63  ;;  %v3411_v0 = vld [vmem:[#allocation7_spill] sm:$0xff]  ;;  %v3412_v63 = vld [vmem:[#allocation8_spill] sm:$0xff] }
 0x5c8   : > { %v1966_v28 = vmul.f32 %v3228_v26, %v1897_v18 }
 0x5cb   : > { %v2333_v62 = vpop.eup %2332 }
 0x5cc   : > { %v2335_v7 = vpop.eup %2334  ;;  %v1908_v49 = vmul.f32 %v2333_v62, %v1903_v21 }
 0x5cd   : > { %v2337_v47 = vpop.eup %2336  ;;  %v1915_v36 = vmul.f32 %v2335_v7, %v1904_v25 }
 0x5ce   : > { %v2339_v39 = vpop.eup %2338  ;;  %v1910_v5 = vsel %vm1909_vm2, %v1903_v21, %v1908_v49  ;;  %v1922_v60 = vmul.f32 %v2337_v47, %v1905_v32 }
 0x5cf   : > { %v1913_v41 = vsel %vm1911_vm14, %v1912_v20, %v1910_v5  ;;  %v1917_v27 = vsel %vm1916_vm15, %v1904_v25, %v1915_v36  ;;  %v1929_v12 = vmul.f32 %v2339_v39, %v1906_v19  ;;  %v2341_v44 = vpop.eup %2340 }
 0x5d0   : > { %v1935_v45 = vadd.f32 1e-08, %v1913_v41  ;;  %v1920_v33 = vsel %vm1918_vm0, %v1919_v43, %v1917_v27  ;;  %v1924_v1 = vsel %vm1923_vm1, %v1905_v32, %v1922_v60  ;;  %v1969_v51 = vmul.f32 %v2341_v44, %v1967_v40 }
 0x5d1   : > { %v1936_v9 = vadd.f32 1e-08, %v1920_v33  ;;  %v1927_v54 = vsel %vm1925_vm3, %v1926_v11, %v1924_v1  ;;  %v1931_v10 = vsel %vm1930_vm4, %v1906_v19, %v1929_v12 }
 0x5d2   : > { %2342 = vrcp.f32 %v1935_v45  ;;  %v1937_v2 = vadd.f32 1e-08, %v1927_v54  ;;  %v1934_v16 = vsel %vm1932_vm5, %v1933_v50, %v1931_v10  ;;  %v1971_v14 = vsel %vm1970_vm8, %v1967_v40, %v1969_v51 }
 0x5d3   : > { %2344 = vrcp.f32 %v1936_v9  ;;  %v1938_v8 = vadd.f32 1e-08, %v1934_v16  ;;  %v1974_v4 = vsel %vm1972_vm9, %v1973_v37, %v1971_v14 }
 0x5d4   : > { %2346 = vrcp.f32 %v1937_v2  ;;  %v1975_v58 = vadd.f32 1e-08, %v1974_v4 }
 0x5d5   : > { %2348 = vrcp.f32 %v1938_v8 }
 0x5d6   : > { %2350 = vrcp.f32 %v1975_v58 }
 0x5dc   : > { %v2343_v48 = vpop.eup %2342 }
 0x5dd   : > { %v2345_v31 = vpop.eup %2344  ;;  %v1940_v6 = vmul.f32 %v2343_v48, %v1898_v24 }
 0x5de   : > { %v2347_v23 = vpop.eup %2346  ;;  %v1942_v55 = vmul.f32 %v2345_v31, %v1899_v30 }
 0x5df   : > { %v2349_v35 = vpop.eup %2348  ;;  %v1947_v17 = vsub.f32 %v3409_v29, %v1940_v6  ;;  %v1944_v22 = vmul.f32 %v2347_v23, %v1900_v52 }
 0x5e0   : > { %v1948_v53 = vsub.f32 %v3410_v38, %v1942_v55  ;;  %v1946_v13 = vmul.f32 %v2349_v35, %v1901_v61  ;;  %v2351_v34 = vpop.eup %2350 }
 0x5e1   : > { %1951 = vst [vmem:[%s3290_s10] sm:$0xff] %v1947_v17  ;;  %v1949_v15 = vsub.f32 %v3411_v0, %v1944_v22  ;;  %v1977_v57 = vmul.f32 %v2351_v34, %v1966_v28 }
 0x5e2   : > { %1952 = vst [vmem:[%s3290_s10 + $0x8] sm:$0xff] %v1948_v53  ;;  %v1950_v56 = vsub.f32 %v3412_v63, %v1946_v13 }
 0x5e3   : > { %1953 = vst [vmem:[%s3290_s10 + $0x10] sm:$0xff] %v1949_v15  ;;  %v1978_v46 = vsub.f32 %v3413_v59, %v1977_v57 }
 0x5e4   : > { %1954 = vst [vmem:[%s3290_s10 + $0x18] sm:$0xff] %v1950_v56 }
 0x5e5   : > { %1979 = vst [vmem:[%s3289_s9] sm:$0xff] %v1978_v46 }
 0x5e6 PF: > { %s28_s21 = sadd.s32 1, %s2377_s21  }
 0x5e7   : > { %p25_p3 = scmp.ge.s32.totalorder %s28_s21, 6  }
 0x5e9   :  { %27 = sbr.rel (!%p25_p3) target bundleno = 5 (0x5), region = 154 }
 0x5f0   :  { %2033 = vsyncpa [#allocation3], 1 }
 0x5f1   :  { %2035 = vsyncpa [#allocation3 + $0x1], 1 }

</bundles_post_ra>
